<compile_context>
chip_gen: v5e
topology: v5e:2x2
jax: 0.10.0
libtpu: 0.0.40
codegen_flags: <defaults>
</compile_context>

<pallas_src>
from functools import partial

import jax
import jax.numpy as jnp
from jax.experimental import pallas as pl
from jax.experimental.pallas import tpu as pltpu


# ---------------------------------------------------------------------------
# In-kernel math helpers
# ---------------------------------------------------------------------------

def _erf(z):
    """erf via Abramowitz & Stegun 7.1.26 (|err| < 1.5e-7 in f32).

    Built only from mul/add/div/exp/abs/compare/select so it lowers on Mosaic
    for both f32 and bf16 operands (no dependence on an erf primitive)."""
    a1, a2, a3, a4, a5 = (0.254829592, -0.284496736, 1.421413741,
                          -1.453152027, 1.061405429)
    p = 0.3275911
    za = jnp.abs(z)
    t = 1.0 / (1.0 + p * za)
    poly = ((((a5 * t + a4) * t + a3) * t + a2) * t + a1) * t
    e = 1.0 - poly * jnp.exp(-(za * za))
    return jnp.where(z >= 0, e, -e)


def _gelu_exact(z):
    """Exact (erf) GELU, matching PyTorch nn.GELU() default."""
    return z * (0.5 * (1.0 + _erf(z * 0.7071067811865476)))


# ---------------------------------------------------------------------------
# Kernel
# ---------------------------------------------------------------------------

def _reversible_block_kernel(x_ref,
                             fw1_ref, fb1_ref, fw2_ref, fb2_ref,
                             gw1_ref, gb1_ref, gw2_ref, gb2_ref,
                             o_ref, *, d, gelu_dtype):
    cdt = fw1_ref.dtype          # bf16 matmul operands, f32 MXU accumulation

    def mlp(z_cdt, w1_ref, b1_ref, w2_ref, b2_ref):
        h = jnp.dot(z_cdt, w1_ref[...], preferred_element_type=jnp.float32)
        h = (h + b1_ref[...]).astype(gelu_dtype)   # GELU in bf16 on v6e/v7x
        h = _gelu_exact(h).astype(cdt)             # no-op cast when gelu_dtype==cdt
        return jnp.dot(h, w2_ref[...], preferred_element_type=jnp.float32) + b2_ref[...]

    # y1 = x1 + f(x2): read x2 only as the matmul operand, read x1 just before the
    # residual add, store y1 immediately -> short vreg live ranges (no spills).
    f_x2 = mlp(x_ref[:, d:].astype(cdt), fw1_ref, fb1_ref, fw2_ref, fb2_ref)
    y1 = x_ref[:, :d] + f_x2
    o_ref[:, :d] = y1.astype(o_ref.dtype)

    # y2 = x2 + g(y1): re-read x2 from VMEM for the residual instead of keeping it
    # live across both MLPs (a vld is far cheaper than spill vst+vld).
    g_y1 = mlp(y1.astype(cdt), gw1_ref, gb1_ref, gw2_ref, gb2_ref)
    o_ref[:, d:] = (x_ref[:, d:] + g_y1).astype(o_ref.dtype)


# ---------------------------------------------------------------------------
# Host-side wrapper
# ---------------------------------------------------------------------------

def prepare_params(params, *, matmul_dtype=jnp.bfloat16):
    """Cast weights to the MXU operand dtype and lay biases out lane-major, once.

    Call this once outside the per-step hot path; passing raw f32 params to
    reversible_block_forward still works but re-casts weights on every call."""
    fw1, fb1, fw2, fb2, gw1, gb1, gw2, gb2 = params
    w = lambda a: jnp.asarray(a, matmul_dtype)
    b = lambda a: jnp.asarray(a, jnp.float32).reshape(1, -1)
    return (w(fw1), b(fb1), w(fw2), b(fb2), w(gw1), b(gb1), w(gw2), b(gb2))


def _vmem_capacity_bytes():
    try:
        cap = getattr(pltpu.get_tpu_info(), "vmem_capacity_bytes", None)
        if cap:
            return int(cap)
    except Exception:
        pass
    return 64 * 1024 * 1024        # conservative default = v7x per-core VMEM


def _gelu_compute_dtype():
    try:
        kind = jax.devices()[0].device_kind.lower()
    except Exception:
        kind = ""
    # <= v5: no bf16 VPU/EUP -> keep the GELU in f32 there.
    if any(tag in kind for tag in ("v2", "v3", "v4", "v5")):
        return jnp.float32
    return jnp.bfloat16


def reversible_block_forward(x, params, *, tile_m=512, vmem_cap_bytes=None):
    """x: [B, S, 2*D]. params: (fw1, fb1, fw2, fb2, gw1, gb1, gw2, gb2), either
    raw (f32 weights, 1-D biases) or pre-cast via prepare_params().

    Note: passing bf16 x (and getting bf16 out) halves HBM traffic on this
    memory-bound kernel; kept f32 by default since reversible training
    reconstructs activations from the outputs."""
    B, S, two_d = x.shape
    assert two_d % 2 == 0, "feature dim must be even for the reversible split"
    d = two_d // 2

    if params[0].dtype != jnp.bfloat16 or params[1].ndim != 2:
        # Prefer calling prepare_params() once outside the hot path (saves a
        # per-call f32->bf16 weight read/write round-trip in HBM).
        params = prepare_params(params)
    fw1b, fb1r, fw2b, fb2r, gw1b, gb1r, gw2b, gb2r = params
    h_dim = fw1b.shape[1]
    assert fw1b.shape[0] == d and fw2b.shape == (h_dim, d)

    rows = B * S
    x2d = x.reshape(rows, two_d)
    gelu_dtype = _gelu_compute_dtype()
    hw_vmem = _vmem_capacity_bytes()
    if vmem_cap_bytes is None:
        # 96 MiB on 128 MiB parts (v5e/v6e), 48 MiB on v7x's 64 MiB.
        vmem_cap_bytes = int(0.75 * hw_vmem)

    def _round8(n):
        return ((n + 7) // 8) * 8

    # Row tile: >=8 sublanes, <= rows (rounded), and small enough to give >=4 grid
    # steps when rows permit (v7x has 2 TensorCores; the double-buffer pipeline
    # also needs a few steps to hide per-step DMA).
    tile_m = max(8, min(_round8(int(tile_m)), _round8(rows),
                        max(8, _round8(pl.cdiv(rows, 4)))))

    weight_bytes = sum(int(a.size) * a.dtype.itemsize
                       for a in (fw1b, fw2b, gw1b, gw2b, fb1r, fb2r, gb1r, gb2r))
    maxhd = max(h_dim, d)
    io_itemsize = x.dtype.itemsize

    def _budget(tm, weight_bufs):
        io = 2 * 2 * tm * two_d * io_itemsize     # x + out tiles, double-buffered
        inter = tm * maxhd * (6 * 4 + 4 * 2)      # f32 h/f_x2/y1/h2/g_y1/y2 + bf16 copies
        return weight_bufs * weight_bytes + io + inter

    # Size the tile assuming single-buffered weights (their block never changes).
    while tile_m > 8 and _budget(tile_m, 1) > vmem_cap_bytes:
        tile_m = max(8, _round8(tile_m // 2))

    # Scoped-VMEM limit: one calibrated estimate (no double hedge); sized to also
    # cover the double-buffered-weights fallback plus Mosaic internal scratch.
    vmem_limit = int(min(int(0.9 * hw_vmem),
                         max(_budget(tile_m, 2) + (8 << 20), 32 << 20)))

    grid = (pl.cdiv(rows, tile_m),)   # ragged last block: padded reads, masked writes

    def _call(single_buffer_weights):
        if single_buffer_weights:
            # Grid-invariant operands: one resident copy is enough.
            def w_spec(shape):
                return pl.BlockSpec(shape, lambda i: (0, 0),
                                    pipeline_mode=pl.Buffered(1))
        else:
            def w_spec(shape):
                return pl.BlockSpec(shape, lambda i: (0, 0))

        return pl.pallas_call(
            partial(_reversible_block_kernel, d=d, gelu_dtype=gelu_dtype),
            out_shape=jax.ShapeDtypeStruct((rows, two_d), x.dtype),
            grid_spec=pl.GridSpec(
                grid=grid,
                in_specs=[
                    pl.BlockSpec((tile_m, two_d), lambda i: (i, 0)),   # x row tile
                    w_spec(fw1b.shape), w_spec(fb1r.shape),
                    w_spec(fw2b.shape), w_spec(fb2r.shape),
                    w_spec(gw1b.shape), w_spec(gb1r.shape),
                    w_spec(gw2b.shape), w_spec(gb2r.shape),
                ],
                out_specs=pl.BlockSpec((tile_m, two_d), lambda i: (i, 0)),
            ),
            compiler_params=pltpu.CompilerParams(
                dimension_semantics=("parallel",),
                vmem_limit_bytes=vmem_limit,
            ),
        )(x2d, fw1b, fb1r, fw2b, fb2r, gw1b, gb1r, gw2b, gb2r)

    try:
        out = _call(single_buffer_weights=True)
    except Exception:
        # pipeline_mode=pl.Buffered(1) rejected by this runtime: default buffering.
        out = _call(single_buffer_weights=False)

    return out.reshape(B, S, two_d)


# ---------------------------------------------------------------------------
# Pure-JAX reference (ReversibleBlock.forward semantics)
# ---------------------------------------------------------------------------

def reference_forward(x, params, *, matmul_dtype=jnp.float32):
    """Exact-erf GELU (PyTorch nn.GELU default). matmul_dtype=bf16 mirrors the
    kernel's bf16-operand / f32-accumulate MXU matmuls."""
    fw1, fb1, fw2, fb2, gw1, gb1, gw2, gb2 = params
    x1, x2 = jnp.split(x, 2, axis=2)

    def mlp(z, w1, b1, w2, b2):
        h = jnp.dot(z.astype(matmul_dtype), w1.astype(matmul_dtype),
                    preferred_element_type=jnp.float32) + b1
        h = jax.nn.gelu(h, approximate=False)
        return jnp.dot(h.astype(matmul_dtype), w2.astype(matmul_dtype),
                       preferred_element_type=jnp.float32) + b2

    y1 = x1 + mlp(x2, fw1, fb1, fw2, fb2)
    y2 = x2 + mlp(y1, gw1, gb1, gw2, gb2)
    return jnp.concatenate([y1, y2], axis=2)


if __name__ == "__main__":
    B, S, D, H = 2, 8, 128, 128   # x: [B, S, 2*D]
    key = jax.random.PRNGKey(0)
    keys = jax.random.split(key, 9)

    x = jax.random.normal(keys[0], (B, S, 2 * D), dtype=jnp.float32)

    def w_scale(fan_in):
        return 1.0 / jnp.sqrt(jnp.asarray(fan_in, jnp.float32))

    fw1 = jax.random.normal(keys[1], (D, H), jnp.float32) * w_scale(D)
    fb1 = jax.random.normal(keys[2], (H,), jnp.float32) * 0.01
    fw2 = jax.random.normal(keys[3], (H, D), jnp.float32) * w_scale(H)
    fb2 = jax.random.normal(keys[4], (D,), jnp.float32) * 0.01
    gw1 = jax.random.normal(keys[5], (D, H), jnp.float32) * w_scale(D)
    gb1 = jax.random.normal(keys[6], (H,), jnp.float32) * 0.01
    gw2 = jax.random.normal(keys[7], (H, D), jnp.float32) * w_scale(H)
    gb2 = jax.random.normal(keys[8], (D,), jnp.float32) * 0.01
    raw_params = (fw1, fb1, fw2, fb2, gw1, gb1, gw2, gb2)

    # Cast weights to the MXU dtype once, outside the per-call hot path.
    params = prepare_params(raw_params)

    out = jax.block_until_ready(reversible_block_forward(x, params))

    ref_bf16 = reference_forward(x, raw_params, matmul_dtype=jnp.bfloat16)
    ref_f32 = reference_forward(x, raw_params, matmul_dtype=jnp.float32)
    assert out.shape == ref_f32.shape == (B, S, 2 * D)

    def rel_err(a, b):
        a = a.astype(jnp.float32)
        b = b.astype(jnp.float32)
        return float(jnp.linalg.norm(a - b) / (jnp.linalg.norm(b) + 1e-12))

    err_bf16 = rel_err(out, ref_bf16)
    err_f32 = rel_err(out, ref_f32)
    assert err_bf16 < 2e-2, f"mismatch vs bf16-matched reference: rel_err={err_bf16}"
    assert err_f32 < 4e-2, f"mismatch vs f32 reference (module semantics): rel_err={err_f32}"

    # Exercise the ragged-tail path (rows not a multiple of the row tile).
    x_odd = jax.random.normal(keys[0], (3, 5, 2 * D), dtype=jnp.float32)
    out_odd = jax.block_until_ready(reversible_block_forward(x_odd, params))
    ref_odd = reference_forward(x_odd, raw_params, matmul_dtype=jnp.bfloat16)
    assert out_odd.shape == (3, 5, 2 * D)
    err_odd = rel_err(out_odd, ref_odd)
    assert err_odd < 2e-2, f"mismatch on non-divisible rows: rel_err={err_odd}"

    # TODO(synk): backward_pass (reversible activation reconstruction for autograd)
    # is a training-time utility, not part of the forward pass; not implemented here.
    print("KERNEL_OK")
</pallas_src>

<mosaic_0001>
module attributes {stable_mosaic.version = 11 : i64} {
  func.func @_reversible_block_kernel(%arg0: i32, %arg1: memref<8x256xf32, #tpu.memory_space<vmem>>, %arg2: memref<128x128xbf16, #tpu.memory_space<vmem>>, %arg3: memref<1x128xf32, #tpu.memory_space<vmem>>, %arg4: memref<128x128xbf16, #tpu.memory_space<vmem>>, %arg5: memref<1x128xf32, #tpu.memory_space<vmem>>, %arg6: memref<128x128xbf16, #tpu.memory_space<vmem>>, %arg7: memref<1x128xf32, #tpu.memory_space<vmem>>, %arg8: memref<128x128xbf16, #tpu.memory_space<vmem>>, %arg9: memref<1x128xf32, #tpu.memory_space<vmem>>, %arg10: memref<8x256xf32, #tpu.memory_space<vmem>>) attributes {dimension_semantics = [#tpu.dimension_semantics<parallel>], iteration_bounds = array<i64: 2>, scalar_prefetch = 0 : i64, scratch_operands = 0 : i64, tpu.core_type = #tpu.core_type<tc>, window_params = [{transform_indices = @transform_0, window_bounds = array<i64: 8, 256>}, {pipeline_mode = #tpu.pipeline_mode<synchronous>, transform_indices = @transform_1, window_bounds = array<i64: 128, 128>}, {pipeline_mode = #tpu.pipeline_mode<synchronous>, transform_indices = @transform_2, window_bounds = array<i64: 1, 128>}, {pipeline_mode = #tpu.pipeline_mode<synchronous>, transform_indices = @transform_3, window_bounds = array<i64: 128, 128>}, {pipeline_mode = #tpu.pipeline_mode<synchronous>, transform_indices = @transform_4, window_bounds = array<i64: 1, 128>}, {pipeline_mode = #tpu.pipeline_mode<synchronous>, transform_indices = @transform_5, window_bounds = array<i64: 128, 128>}, {pipeline_mode = #tpu.pipeline_mode<synchronous>, transform_indices = @transform_6, window_bounds = array<i64: 1, 128>}, {pipeline_mode = #tpu.pipeline_mode<synchronous>, transform_indices = @transform_7, window_bounds = array<i64: 128, 128>}, {pipeline_mode = #tpu.pipeline_mode<synchronous>, transform_indices = @transform_8, window_bounds = array<i64: 1, 128>}, {transform_indices = @transform_9, window_bounds = array<i64: 8, 256>}]} {
    %c0 = arith.constant 0 : index
    %c128 = arith.constant 128 : index
    %0 = vector.load %arg1[%c0, %c128] : memref<8x256xf32, #tpu.memory_space<vmem>>, vector<8x128xf32>
    %1 = arith.truncf %0 : vector<8x128xf32> to vector<8x128xbf16>
    %c0_0 = arith.constant 0 : index
    %c0_1 = arith.constant 0 : index
    %2 = vector.load %arg2[%c0_0, %c0_1] : memref<128x128xbf16, #tpu.memory_space<vmem>>, vector<128x128xbf16>
    %cst = arith.constant dense<0.000000e+00> : vector<8x128xf32>
    %3 = tpu.matmul %1, %2, %cst {dimension_numbers = #tpu.dot_dimension_numbers<[1], [0], [0], [1], [0, 0, 1, 1], [], []>} : vector<8x128xbf16>, vector<128x128xbf16>, vector<8x128xf32> -> vector<8x128xf32>
    %c0_2 = arith.constant 0 : index
    %c0_3 = arith.constant 0 : index
    %4 = vector.load %arg3[%c0_2, %c0_3] : memref<1x128xf32, #tpu.memory_space<vmem>>, vector<1x128xf32>
    %5 = vector.broadcast %4 : vector<1x128xf32> to vector<8x128xf32>
    %6 = arith.addf %3, %5 : vector<8x128xf32>
    %7 = arith.truncf %6 : vector<8x128xf32> to vector<8x128xbf16>
    %cst_4 = arith.constant 7.070310e-01 : bf16
    %8 = vector.broadcast %cst_4 : bf16 to vector<8x128xbf16>
    %9 = arith.mulf %7, %8 : vector<8x128xbf16>
    %10 = math.absf %9 : vector<8x128xbf16>
    %cst_5 = arith.constant 3.281250e-01 : bf16
    %11 = vector.broadcast %cst_5 : bf16 to vector<8x128xbf16>
    %12 = arith.mulf %11, %10 : vector<8x128xbf16>
    %cst_6 = arith.constant 1.000000e+00 : bf16
    %13 = vector.broadcast %cst_6 : bf16 to vector<8x128xbf16>
    %14 = arith.addf %13, %12 : vector<8x128xbf16>
    %cst_7 = arith.constant 1.000000e+00 : bf16
    %15 = vector.broadcast %cst_7 : bf16 to vector<8x128xbf16>
    %16 = arith.divf %15, %14 : vector<8x128xbf16>
    %cst_8 = arith.constant 1.062500e+00 : bf16
    %17 = vector.broadcast %cst_8 : bf16 to vector<8x128xbf16>
    %18 = arith.mulf %17, %16 : vector<8x128xbf16>
    %cst_9 = arith.constant -1.453130e+00 : bf16
    %19 = vector.broadcast %cst_9 : bf16 to vector<8x128xbf16>
    %20 = arith.addf %18, %19 : vector<8x128xbf16>
    %21 = arith.mulf %20, %16 : vector<8x128xbf16>
    %cst_10 = arith.constant 1.421880e+00 : bf16
    %22 = vector.broadcast %cst_10 : bf16 to vector<8x128xbf16>
    %23 = arith.addf %21, %22 : vector<8x128xbf16>
    %24 = arith.mulf %23, %16 : vector<8x128xbf16>
    %cst_11 = arith.constant -2.851560e-01 : bf16
    %25 = vector.broadcast %cst_11 : bf16 to vector<8x128xbf16>
    %26 = arith.addf %24, %25 : vector<8x128xbf16>
    %27 = arith.mulf %26, %16 : vector<8x128xbf16>
    %cst_12 = arith.constant 2.539060e-01 : bf16
    %28 = vector.broadcast %cst_12 : bf16 to vector<8x128xbf16>
    %29 = arith.addf %27, %28 : vector<8x128xbf16>
    %30 = arith.mulf %29, %16 : vector<8x128xbf16>
    %31 = arith.mulf %10, %10 : vector<8x128xbf16>
    %cst_13 = arith.constant 0.000000e+00 : bf16
    %32 = vector.broadcast %cst_13 : bf16 to vector<8x128xbf16>
    %33 = arith.subf %32, %31 : vector<8x128xbf16>
    %34 = math.exp %33 : vector<8x128xbf16>
    %35 = arith.mulf %30, %34 : vector<8x128xbf16>
    %cst_14 = arith.constant 1.000000e+00 : bf16
    %36 = vector.broadcast %cst_14 : bf16 to vector<8x128xbf16>
    %37 = arith.subf %36, %35 : vector<8x128xbf16>
    %cst_15 = arith.constant 0.000000e+00 : bf16
    %38 = vector.broadcast %cst_15 : bf16 to vector<8x128xbf16>
    %39 = arith.cmpf oge, %9, %38 : vector<8x128xbf16>
    %cst_16 = arith.constant 0.000000e+00 : bf16
    %40 = vector.broadcast %cst_16 : bf16 to vector<8x128xbf16>
    %41 = arith.subf %40, %37 : vector<8x128xbf16>
    %42 = arith.select %39, %37, %41 : vector<8x128xi1>, vector<8x128xbf16>
    %cst_17 = arith.constant 1.000000e+00 : bf16
    %43 = vector.broadcast %cst_17 : bf16 to vector<8x128xbf16>
    %44 = arith.addf %43, %42 : vector<8x128xbf16>
    %cst_18 = arith.constant 5.000000e-01 : bf16
    %45 = vector.broadcast %cst_18 : bf16 to vector<8x128xbf16>
    %46 = arith.mulf %45, %44 : vector<8x128xbf16>
    %47 = arith.mulf %7, %46 : vector<8x128xbf16>
    %c0_19 = arith.constant 0 : index
    %c0_20 = arith.constant 0 : index
    %48 = vector.load %arg4[%c0_19, %c0_20] : memref<128x128xbf16, #tpu.memory_space<vmem>>, vector<128x128xbf16>
    %cst_21 = arith.constant dense<0.000000e+00> : vector<8x128xf32>
    %49 = tpu.matmul %47, %48, %cst_21 {dimension_numbers = #tpu.dot_dimension_numbers<[1], [0], [0], [1], [0, 0, 1, 1], [], []>} : vector<8x128xbf16>, vector<128x128xbf16>, vector<8x128xf32> -> vector<8x128xf32>
    %c0_22 = arith.constant 0 : index
    %c0_23 = arith.constant 0 : index
    %50 = vector.load %arg5[%c0_22, %c0_23] : memref<1x128xf32, #tpu.memory_space<vmem>>, vector<1x128xf32>
    %51 = vector.broadcast %50 : vector<1x128xf32> to vector<8x128xf32>
    %52 = arith.addf %49, %51 : vector<8x128xf32>
    %c0_24 = arith.constant 0 : index
    %c0_25 = arith.constant 0 : index
    %53 = vector.load %arg1[%c0_24, %c0_25] : memref<8x256xf32, #tpu.memory_space<vmem>>, vector<8x128xf32>
    %54 = arith.addf %53, %52 : vector<8x128xf32>
    %c0_26 = arith.constant 0 : index
    %c0_27 = arith.constant 0 : index
    %55 = vector.load %arg10[%c0_26, %c0_27] : memref<8x256xf32, #tpu.memory_space<vmem>>, vector<8x128xf32>
    tpu.vector_store %arg10[%c0_26, %c0_27], %54 {strides = array<i32>} : memref<8x256xf32, #tpu.memory_space<vmem>>, vector<8x128xf32>,
    %56 = arith.truncf %54 : vector<8x128xf32> to vector<8x128xbf16>
    %c0_28 = arith.constant 0 : index
    %c0_29 = arith.constant 0 : index
    %57 = vector.load %arg6[%c0_28, %c0_29] : memref<128x128xbf16, #tpu.memory_space<vmem>>, vector<128x128xbf16>
    %cst_30 = arith.constant dense<0.000000e+00> : vector<8x128xf32>
    %58 = tpu.matmul %56, %57, %cst_30 {dimension_numbers = #tpu.dot_dimension_numbers<[1], [0], [0], [1], [0, 0, 1, 1], [], []>} : vector<8x128xbf16>, vector<128x128xbf16>, vector<8x128xf32> -> vector<8x128xf32>
    %c0_31 = arith.constant 0 : index
    %c0_32 = arith.constant 0 : index
    %59 = vector.load %arg7[%c0_31, %c0_32] : memref<1x128xf32, #tpu.memory_space<vmem>>, vector<1x128xf32>
    %60 = vector.broadcast %59 : vector<1x128xf32> to vector<8x128xf32>
    %61 = arith.addf %58, %60 : vector<8x128xf32>
    %62 = arith.truncf %61 : vector<8x128xf32> to vector<8x128xbf16>
    %cst_33 = arith.constant 7.070310e-01 : bf16
    %63 = vector.broadcast %cst_33 : bf16 to vector<8x128xbf16>
    %64 = arith.mulf %62, %63 : vector<8x128xbf16>
    %65 = math.absf %64 : vector<8x128xbf16>
    %cst_34 = arith.constant 3.281250e-01 : bf16
    %66 = vector.broadcast %cst_34 : bf16 to vector<8x128xbf16>
    %67 = arith.mulf %66, %65 : vector<8x128xbf16>
    %cst_35 = arith.constant 1.000000e+00 : bf16
    %68 = vector.broadcast %cst_35 : bf16 to vector<8x128xbf16>
    %69 = arith.addf %68, %67 : vector<8x128xbf16>
    %cst_36 = arith.constant 1.000000e+00 : bf16
    %70 = vector.broadcast %cst_36 : bf16 to vector<8x128xbf16>
    %71 = arith.divf %70, %69 : vector<8x128xbf16>
    %cst_37 = arith.constant 1.062500e+00 : bf16
    %72 = vector.broadcast %cst_37 : bf16 to vector<8x128xbf16>
    %73 = arith.mulf %72, %71 : vector<8x128xbf16>
    %cst_38 = arith.constant -1.453130e+00 : bf16
    %74 = vector.broadcast %cst_38 : bf16 to vector<8x128xbf16>
    %75 = arith.addf %73, %74 : vector<8x128xbf16>
    %76 = arith.mulf %75, %71 : vector<8x128xbf16>
    %cst_39 = arith.constant 1.421880e+00 : bf16
    %77 = vector.broadcast %cst_39 : bf16 to vector<8x128xbf16>
    %78 = arith.addf %76, %77 : vector<8x128xbf16>
    %79 = arith.mulf %78, %71 : vector<8x128xbf16>
    %cst_40 = arith.constant -2.851560e-01 : bf16
    %80 = vector.broadcast %cst_40 : bf16 to vector<8x128xbf16>
    %81 = arith.addf %79, %80 : vector<8x128xbf16>
    %82 = arith.mulf %81, %71 : vector<8x128xbf16>
    %cst_41 = arith.constant 2.539060e-01 : bf16
    %83 = vector.broadcast %cst_41 : bf16 to vector<8x128xbf16>
    %84 = arith.addf %82, %83 : vector<8x128xbf16>
    %85 = arith.mulf %84, %71 : vector<8x128xbf16>
    %86 = arith.mulf %65, %65 : vector<8x128xbf16>
    %cst_42 = arith.constant 0.000000e+00 : bf16
    %87 = vector.broadcast %cst_42 : bf16 to vector<8x128xbf16>
    %88 = arith.subf %87, %86 : vector<8x128xbf16>
    %89 = math.exp %88 : vector<8x128xbf16>
    %90 = arith.mulf %85, %89 : vector<8x128xbf16>
    %cst_43 = arith.constant 1.000000e+00 : bf16
    %91 = vector.broadcast %cst_43 : bf16 to vector<8x128xbf16>
    %92 = arith.subf %91, %90 : vector<8x128xbf16>
    %cst_44 = arith.constant 0.000000e+00 : bf16
    %93 = vector.broadcast %cst_44 : bf16 to vector<8x128xbf16>
    %94 = arith.cmpf oge, %64, %93 : vector<8x128xbf16>
    %cst_45 = arith.constant 0.000000e+00 : bf16
    %95 = vector.broadcast %cst_45 : bf16 to vector<8x128xbf16>
    %96 = arith.subf %95, %92 : vector<8x128xbf16>
    %97 = arith.select %94, %92, %96 : vector<8x128xi1>, vector<8x128xbf16>
    %cst_46 = arith.constant 1.000000e+00 : bf16
    %98 = vector.broadcast %cst_46 : bf16 to vector<8x128xbf16>
    %99 = arith.addf %98, %97 : vector<8x128xbf16>
    %cst_47 = arith.constant 5.000000e-01 : bf16
    %100 = vector.broadcast %cst_47 : bf16 to vector<8x128xbf16>
    %101 = arith.mulf %100, %99 : vector<8x128xbf16>
    %102 = arith.mulf %62, %101 : vector<8x128xbf16>
    %c0_48 = arith.constant 0 : index
    %c0_49 = arith.constant 0 : index
    %103 = vector.load %arg8[%c0_48, %c0_49] : memref<128x128xbf16, #tpu.memory_space<vmem>>, vector<128x128xbf16>
    %cst_50 = arith.constant dense<0.000000e+00> : vector<8x128xf32>
    %104 = tpu.matmul %102, %103, %cst_50 {dimension_numbers = #tpu.dot_dimension_numbers<[1], [0], [0], [1], [0, 0, 1, 1], [], []>} : vector<8x128xbf16>, vector<128x128xbf16>, vector<8x128xf32> -> vector<8x128xf32>
    %c0_51 = arith.constant 0 : index
    %c0_52 = arith.constant 0 : index
    %105 = vector.load %arg9[%c0_51, %c0_52] : memref<1x128xf32, #tpu.memory_space<vmem>>, vector<1x128xf32>
    %106 = vector.broadcast %105 : vector<1x128xf32> to vector<8x128xf32>
    %107 = arith.addf %104, %106 : vector<8x128xf32>
    %c0_53 = arith.constant 0 : index
    %c128_54 = arith.constant 128 : index
    %108 = vector.load %arg1[%c0_53, %c128_54] : memref<8x256xf32, #tpu.memory_space<vmem>>, vector<8x128xf32>
    %109 = arith.addf %108, %107 : vector<8x128xf32>
    %c0_55 = arith.constant 0 : index
    %c128_56 = arith.constant 128 : index
    %110 = vector.load %arg10[%c0_55, %c128_56] : memref<8x256xf32, #tpu.memory_space<vmem>>, vector<8x128xf32>
    tpu.vector_store %arg10[%c0_55, %c128_56], %109 {strides = array<i32>} : memref<8x256xf32, #tpu.memory_space<vmem>>, vector<8x128xf32>,
    return
  }
  func.func @transform_0(%arg0: i32) -> (i32, i32) {
    %c0_i32 = arith.constant 0 : i32
    %c0_i32_0 = arith.constant 0 : i32
    return %arg0, %c0_i32 : i32, i32
  }
  func.func @transform_1(%arg0: i32) -> (i32, i32) {
    %c0_i32 = arith.constant 0 : i32
    %c0_i32_0 = arith.constant 0 : i32
    %c0_i32_1 = arith.constant 0 : i32
    return %c0_i32, %c0_i32_0 : i32, i32
  }
  func.func @transform_2(%arg0: i32) -> (i32, i32) {
    %c0_i32 = arith.constant 0 : i32
    %c0_i32_0 = arith.constant 0 : i32
    %c0_i32_1 = arith.constant 0 : i32
    return %c0_i32, %c0_i32_0 : i32, i32
  }
  func.func @transform_3(%arg0: i32) -> (i32, i32) {
    %c0_i32 = arith.constant 0 : i32
    %c0_i32_0 = arith.constant 0 : i32
    %c0_i32_1 = arith.constant 0 : i32
    return %c0_i32, %c0_i32_0 : i32, i32
  }
  func.func @transform_4(%arg0: i32) -> (i32, i32) {
    %c0_i32 = arith.constant 0 : i32
    %c0_i32_0 = arith.constant 0 : i32
    %c0_i32_1 = arith.constant 0 : i32
    return %c0_i32, %c0_i32_0 : i32, i32
  }
  func.func @transform_5(%arg0: i32) -> (i32, i32) {
    %c0_i32 = arith.constant 0 : i32
    %c0_i32_0 = arith.constant 0 : i32
    %c0_i32_1 = arith.constant 0 : i32
    return %c0_i32, %c0_i32_0 : i32, i32
  }
  func.func @transform_6(%arg0: i32) -> (i32, i32) {
    %c0_i32 = arith.constant 0 : i32
    %c0_i32_0 = arith.constant 0 : i32
    %c0_i32_1 = arith.constant 0 : i32
    return %c0_i32, %c0_i32_0 : i32, i32
  }
  func.func @transform_7(%arg0: i32) -> (i32, i32) {
    %c0_i32 = arith.constant 0 : i32
    %c0_i32_0 = arith.constant 0 : i32
    %c0_i32_1 = arith.constant 0 : i32
    return %c0_i32, %c0_i32_0 : i32, i32
  }
  func.func @transform_8(%arg0: i32) -> (i32, i32) {
    %c0_i32 = arith.constant 0 : i32
    %c0_i32_0 = arith.constant 0 : i32
    %c0_i32_1 = arith.constant 0 : i32
    return %c0_i32, %c0_i32_0 : i32, i32
  }
  func.func @transform_9(%arg0: i32) -> (i32, i32) {
    %c0_i32 = arith.constant 0 : i32
    %c0_i32_0 = arith.constant 0 : i32
    return %arg0, %c0_i32 : i32, i32
  }
}

module attributes {stable_mosaic.version = 11 : i64} {
  func.func @_reversible_block_kernel(%arg0: i32, %arg1: memref<8x256xf32, #tpu.memory_space<vmem>>, %arg2: memref<128x128xbf16, #tpu.memory_space<vmem>>, %arg3: memref<1x128xf32, #tpu.memory_space<vmem>>, %arg4: memref<128x128xbf16, #tpu.memory_space<vmem>>, %arg5: memref<1x128xf32, #tpu.memory_space<vmem>>, %arg6: memref<128x128xbf16, #tpu.memory_space<vmem>>, %arg7: memref<1x128xf32, #tpu.memory_space<vmem>>, %arg8: memref<128x128xbf16, #tpu.memory_space<vmem>>, %arg9: memref<1x128xf32, #tpu.memory_space<vmem>>, %arg10: memref<8x256xf32, #tpu.memory_space<vmem>>) attributes {dimension_semantics = [#tpu.dimension_semantics<parallel>], iteration_bounds = array<i64: 2>, scalar_prefetch = 0 : i64, scratch_operands = 0 : i64, tpu.core_type = #tpu.core_type<tc>, window_params = [{transform_indices = @transform_0, window_bounds = array<i64: 8, 256>}, {pipeline_mode = #tpu.pipeline_mode<synchronous>, transform_indices = @transform_1, window_bounds = array<i64: 128, 128>}, {pipeline_mode = #tpu.pipeline_mode<synchronous>, transform_indices = @transform_2, window_bounds = array<i64: 1, 128>}, {pipeline_mode = #tpu.pipeline_mode<synchronous>, transform_indices = @transform_3, window_bounds = array<i64: 128, 128>}, {pipeline_mode = #tpu.pipeline_mode<synchronous>, transform_indices = @transform_4, window_bounds = array<i64: 1, 128>}, {pipeline_mode = #tpu.pipeline_mode<synchronous>, transform_indices = @transform_5, window_bounds = array<i64: 128, 128>}, {pipeline_mode = #tpu.pipeline_mode<synchronous>, transform_indices = @transform_6, window_bounds = array<i64: 1, 128>}, {pipeline_mode = #tpu.pipeline_mode<synchronous>, transform_indices = @transform_7, window_bounds = array<i64: 128, 128>}, {pipeline_mode = #tpu.pipeline_mode<synchronous>, transform_indices = @transform_8, window_bounds = array<i64: 1, 128>}, {transform_indices = @transform_9, window_bounds = array<i64: 8, 256>}]} {
    %c0 = arith.constant 0 : index
    %c128 = arith.constant 128 : index
    %0 = vector.load %arg1[%c0, %c128] : memref<8x256xf32, #tpu.memory_space<vmem>>, vector<8x128xf32>
    %1 = arith.truncf %0 : vector<8x128xf32> to vector<8x128xbf16>
    %c0_0 = arith.constant 0 : index
    %c0_1 = arith.constant 0 : index
    %2 = vector.load %arg2[%c0_0, %c0_1] : memref<128x128xbf16, #tpu.memory_space<vmem>>, vector<128x128xbf16>
    %cst = arith.constant dense<0.000000e+00> : vector<8x128xf32>
    %3 = tpu.matmul %1, %2, %cst {dimension_numbers = #tpu.dot_dimension_numbers<[1], [0], [0], [1], [0, 0, 1, 1], [], []>} : vector<8x128xbf16>, vector<128x128xbf16>, vector<8x128xf32> -> vector<8x128xf32>
    %c0_2 = arith.constant 0 : index
    %c0_3 = arith.constant 0 : index
    %4 = vector.load %arg3[%c0_2, %c0_3] : memref<1x128xf32, #tpu.memory_space<vmem>>, vector<1x128xf32>
    %5 = vector.broadcast %4 : vector<1x128xf32> to vector<8x128xf32>
    %6 = arith.addf %3, %5 : vector<8x128xf32>
    %7 = arith.truncf %6 : vector<8x128xf32> to vector<8x128xbf16>
    %cst_4 = arith.constant 7.070310e-01 : bf16
    %8 = vector.broadcast %cst_4 : bf16 to vector<8x128xbf16>
    %9 = arith.mulf %7, %8 : vector<8x128xbf16>
    %10 = math.absf %9 : vector<8x128xbf16>
    %cst_5 = arith.constant 3.281250e-01 : bf16
    %11 = vector.broadcast %cst_5 : bf16 to vector<8x128xbf16>
    %12 = arith.mulf %11, %10 : vector<8x128xbf16>
    %cst_6 = arith.constant 1.000000e+00 : bf16
    %13 = vector.broadcast %cst_6 : bf16 to vector<8x128xbf16>
    %14 = arith.addf %13, %12 : vector<8x128xbf16>
    %cst_7 = arith.constant 1.000000e+00 : bf16
    %15 = vector.broadcast %cst_7 : bf16 to vector<8x128xbf16>
    %16 = arith.divf %15, %14 : vector<8x128xbf16>
    %cst_8 = arith.constant 1.062500e+00 : bf16
    %17 = vector.broadcast %cst_8 : bf16 to vector<8x128xbf16>
    %18 = arith.mulf %17, %16 : vector<8x128xbf16>
    %cst_9 = arith.constant -1.453130e+00 : bf16
    %19 = vector.broadcast %cst_9 : bf16 to vector<8x128xbf16>
    %20 = arith.addf %18, %19 : vector<8x128xbf16>
    %21 = arith.mulf %20, %16 : vector<8x128xbf16>
    %cst_10 = arith.constant 1.421880e+00 : bf16
    %22 = vector.broadcast %cst_10 : bf16 to vector<8x128xbf16>
    %23 = arith.addf %21, %22 : vector<8x128xbf16>
    %24 = arith.mulf %23, %16 : vector<8x128xbf16>
    %cst_11 = arith.constant -2.851560e-01 : bf16
    %25 = vector.broadcast %cst_11 : bf16 to vector<8x128xbf16>
    %26 = arith.addf %24, %25 : vector<8x128xbf16>
    %27 = arith.mulf %26, %16 : vector<8x128xbf16>
    %cst_12 = arith.constant 2.539060e-01 : bf16
    %28 = vector.broadcast %cst_12 : bf16 to vector<8x128xbf16>
    %29 = arith.addf %27, %28 : vector<8x128xbf16>
    %30 = arith.mulf %29, %16 : vector<8x128xbf16>
    %31 = arith.mulf %10, %10 : vector<8x128xbf16>
    %cst_13 = arith.constant 0.000000e+00 : bf16
    %32 = vector.broadcast %cst_13 : bf16 to vector<8x128xbf16>
    %33 = arith.subf %32, %31 : vector<8x128xbf16>
    %34 = math.exp %33 : vector<8x128xbf16>
    %35 = arith.mulf %30, %34 : vector<8x128xbf16>
    %cst_14 = arith.constant 1.000000e+00 : bf16
    %36 = vector.broadcast %cst_14 : bf16 to vector<8x128xbf16>
    %37 = arith.subf %36, %35 : vector<8x128xbf16>
    %cst_15 = arith.constant 0.000000e+00 : bf16
    %38 = vector.broadcast %cst_15 : bf16 to vector<8x128xbf16>
    %39 = arith.cmpf oge, %9, %38 : vector<8x128xbf16>
    %cst_16 = arith.constant 0.000000e+00 : bf16
    %40 = vector.broadcast %cst_16 : bf16 to vector<8x128xbf16>
    %41 = arith.subf %40, %37 : vector<8x128xbf16>
    %42 = arith.select %39, %37, %41 : vector<8x128xi1>, vector<8x128xbf16>
    %cst_17 = arith.constant 1.000000e+00 : bf16
    %43 = vector.broadcast %cst_17 : bf16 to vector<8x128xbf16>
    %44 = arith.addf %43, %42 : vector<8x128xbf16>
    %cst_18 = arith.constant 5.000000e-01 : bf16
    %45 = vector.broadcast %cst_18 : bf16 to vector<8x128xbf16>
    %46 = arith.mulf %45, %44 : vector<8x128xbf16>
    %47 = arith.mulf %7, %46 : vector<8x128xbf16>
    %c0_19 = arith.constant 0 : index
    %c0_20 = arith.constant 0 : index
    %48 = vector.load %arg4[%c0_19, %c0_20] : memref<128x128xbf16, #tpu.memory_space<vmem>>, vector<128x128xbf16>
    %cst_21 = arith.constant dense<0.000000e+00> : vector<8x128xf32>
    %49 = tpu.matmul %47, %48, %cst_21 {dimension_numbers = #tpu.dot_dimension_numbers<[1], [0], [0], [1], [0, 0, 1, 1], [], []>} : vector<8x128xbf16>, vector<128x128xbf16>, vector<8x128xf32> -> vector<8x128xf32>
    %c0_22 = arith.constant 0 : index
    %c0_23 = arith.constant 0 : index
    %50 = vector.load %arg5[%c0_22, %c0_23] : memref<1x128xf32, #tpu.memory_space<vmem>>, vector<1x128xf32>
    %51 = vector.broadcast %50 : vector<1x128xf32> to vector<8x128xf32>
    %52 = arith.addf %49, %51 : vector<8x128xf32>
    %c0_24 = arith.constant 0 : index
    %c0_25 = arith.constant 0 : index
    %53 = vector.load %arg1[%c0_24, %c0_25] : memref<8x256xf32, #tpu.memory_space<vmem>>, vector<8x128xf32>
    %54 = arith.addf %53, %52 : vector<8x128xf32>
    %c0_26 = arith.constant 0 : index
    %c0_27 = arith.constant 0 : index
    %55 = vector.load %arg10[%c0_26, %c0_27] : memref<8x256xf32, #tpu.memory_space<vmem>>, vector<8x128xf32>
    tpu.vector_store %arg10[%c0_26, %c0_27], %54 {strides = array<i32>} : memref<8x256xf32, #tpu.memory_space<vmem>>, vector<8x128xf32>,
    %56 = arith.truncf %54 : vector<8x128xf32> to vector<8x128xbf16>
    %c0_28 = arith.constant 0 : index
    %c0_29 = arith.constant 0 : index
    %57 = vector.load %arg6[%c0_28, %c0_29] : memref<128x128xbf16, #tpu.memory_space<vmem>>, vector<128x128xbf16>
    %cst_30 = arith.constant dense<0.000000e+00> : vector<8x128xf32>
    %58 = tpu.matmul %56, %57, %cst_30 {dimension_numbers = #tpu.dot_dimension_numbers<[1], [0], [0], [1], [0, 0, 1, 1], [], []>} : vector<8x128xbf16>, vector<128x128xbf16>, vector<8x128xf32> -> vector<8x128xf32>
    %c0_31 = arith.constant 0 : index
    %c0_32 = arith.constant 0 : index
    %59 = vector.load %arg7[%c0_31, %c0_32] : memref<1x128xf32, #tpu.memory_space<vmem>>, vector<1x128xf32>
    %60 = vector.broadcast %59 : vector<1x128xf32> to vector<8x128xf32>
    %61 = arith.addf %58, %60 : vector<8x128xf32>
    %62 = arith.truncf %61 : vector<8x128xf32> to vector<8x128xbf16>
    %cst_33 = arith.constant 7.070310e-01 : bf16
    %63 = vector.broadcast %cst_33 : bf16 to vector<8x128xbf16>
    %64 = arith.mulf %62, %63 : vector<8x128xbf16>
    %65 = math.absf %64 : vector<8x128xbf16>
    %cst_34 = arith.constant 3.281250e-01 : bf16
    %66 = vector.broadcast %cst_34 : bf16 to vector<8x128xbf16>
    %67 = arith.mulf %66, %65 : vector<8x128xbf16>
    %cst_35 = arith.constant 1.000000e+00 : bf16
    %68 = vector.broadcast %cst_35 : bf16 to vector<8x128xbf16>
    %69 = arith.addf %68, %67 : vector<8x128xbf16>
    %cst_36 = arith.constant 1.000000e+00 : bf16
    %70 = vector.broadcast %cst_36 : bf16 to vector<8x128xbf16>
    %71 = arith.divf %70, %69 : vector<8x128xbf16>
    %cst_37 = arith.constant 1.062500e+00 : bf16
    %72 = vector.broadcast %cst_37 : bf16 to vector<8x128xbf16>
    %73 = arith.mulf %72, %71 : vector<8x128xbf16>
    %cst_38 = arith.constant -1.453130e+00 : bf16
    %74 = vector.broadcast %cst_38 : bf16 to vector<8x128xbf16>
    %75 = arith.addf %73, %74 : vector<8x128xbf16>
    %76 = arith.mulf %75, %71 : vector<8x128xbf16>
    %cst_39 = arith.constant 1.421880e+00 : bf16
    %77 = vector.broadcast %cst_39 : bf16 to vector<8x128xbf16>
    %78 = arith.addf %76, %77 : vector<8x128xbf16>
    %79 = arith.mulf %78, %71 : vector<8x128xbf16>
    %cst_40 = arith.constant -2.851560e-01 : bf16
    %80 = vector.broadcast %cst_40 : bf16 to vector<8x128xbf16>
    %81 = arith.addf %79, %80 : vector<8x128xbf16>
    %82 = arith.mulf %81, %71 : vector<8x128xbf16>
    %cst_41 = arith.constant 2.539060e-01 : bf16
    %83 = vector.broadcast %cst_41 : bf16 to vector<8x128xbf16>
    %84 = arith.addf %82, %83 : vector<8x128xbf16>
    %85 = arith.mulf %84, %71 : vector<8x128xbf16>
    %86 = arith.mulf %65, %65 : vector<8x128xbf16>
    %cst_42 = arith.constant 0.000000e+00 : bf16
    %87 = vector.broadcast %cst_42 : bf16 to vector<8x128xbf16>
    %88 = arith.subf %87, %86 : vector<8x128xbf16>
    %89 = math.exp %88 : vector<8x128xbf16>
    %90 = arith.mulf %85, %89 : vector<8x128xbf16>
    %cst_43 = arith.constant 1.000000e+00 : bf16
    %91 = vector.broadcast %cst_43 : bf16 to vector<8x128xbf16>
    %92 = arith.subf %91, %90 : vector<8x128xbf16>
    %cst_44 = arith.constant 0.000000e+00 : bf16
    %93 = vector.broadcast %cst_44 : bf16 to vector<8x128xbf16>
    %94 = arith.cmpf oge, %64, %93 : vector<8x128xbf16>
    %cst_45 = arith.constant 0.000000e+00 : bf16
    %95 = vector.broadcast %cst_45 : bf16 to vector<8x128xbf16>
    %96 = arith.subf %95, %92 : vector<8x128xbf16>
    %97 = arith.select %94, %92, %96 : vector<8x128xi1>, vector<8x128xbf16>
    %cst_46 = arith.constant 1.000000e+00 : bf16
    %98 = vector.broadcast %cst_46 : bf16 to vector<8x128xbf16>
    %99 = arith.addf %98, %97 : vector<8x128xbf16>
    %cst_47 = arith.constant 5.000000e-01 : bf16
    %100 = vector.broadcast %cst_47 : bf16 to vector<8x128xbf16>
    %101 = arith.mulf %100, %99 : vector<8x128xbf16>
    %102 = arith.mulf %62, %101 : vector<8x128xbf16>
    %c0_48 = arith.constant 0 : index
    %c0_49 = arith.constant 0 : index
    %103 = vector.load %arg8[%c0_48, %c0_49] : memref<128x128xbf16, #tpu.memory_space<vmem>>, vector<128x128xbf16>
    %cst_50 = arith.constant dense<0.000000e+00> : vector<8x128xf32>
    %104 = tpu.matmul %102, %103, %cst_50 {dimension_numbers = #tpu.dot_dimension_numbers<[1], [0], [0], [1], [0, 0, 1, 1], [], []>} : vector<8x128xbf16>, vector<128x128xbf16>, vector<8x128xf32> -> vector<8x128xf32>
    %c0_51 = arith.constant 0 : index
    %c0_52 = arith.constant 0 : index
    %105 = vector.load %arg9[%c0_51, %c0_52] : memref<1x128xf32, #tpu.memory_space<vmem>>, vector<1x128xf32>
    %106 = vector.broadcast %105 : vector<1x128xf32> to vector<8x128xf32>
    %107 = arith.addf %104, %106 : vector<8x128xf32>
    %c0_53 = arith.constant 0 : index
    %c128_54 = arith.constant 128 : index
    %108 = vector.load %arg1[%c0_53, %c128_54] : memref<8x256xf32, #tpu.memory_space<vmem>>, vector<8x128xf32>
    %109 = arith.addf %108, %107 : vector<8x128xf32>
    %c0_55 = arith.constant 0 : index
    %c128_56 = arith.constant 128 : index
    %110 = vector.load %arg10[%c0_55, %c128_56] : memref<8x256xf32, #tpu.memory_space<vmem>>, vector<8x128xf32>
    tpu.vector_store %arg10[%c0_55, %c128_56], %109 {strides = array<i32>} : memref<8x256xf32, #tpu.memory_space<vmem>>, vector<8x128xf32>,
    return
  }
  func.func @transform_0(%arg0: i32) -> (i32, i32) {
    %c0_i32 = arith.constant 0 : i32
    %c0_i32_0 = arith.constant 0 : i32
    return %arg0, %c0_i32 : i32, i32
  }
  func.func @transform_1(%arg0: i32) -> (i32, i32) {
    %c0_i32 = arith.constant 0 : i32
    %c0_i32_0 = arith.constant 0 : i32
    %c0_i32_1 = arith.constant 0 : i32
    return %c0_i32, %c0_i32_0 : i32, i32
  }
  func.func @transform_2(%arg0: i32) -> (i32, i32) {
    %c0_i32 = arith.constant 0 : i32
    %c0_i32_0 = arith.constant 0 : i32
    %c0_i32_1 = arith.constant 0 : i32
    return %c0_i32, %c0_i32_0 : i32, i32
  }
  func.func @transform_3(%arg0: i32) -> (i32, i32) {
    %c0_i32 = arith.constant 0 : i32
    %c0_i32_0 = arith.constant 0 : i32
    %c0_i32_1 = arith.constant 0 : i32
    return %c0_i32, %c0_i32_0 : i32, i32
  }
  func.func @transform_4(%arg0: i32) -> (i32, i32) {
    %c0_i32 = arith.constant 0 : i32
    %c0_i32_0 = arith.constant 0 : i32
    %c0_i32_1 = arith.constant 0 : i32
    return %c0_i32, %c0_i32_0 : i32, i32
  }
  func.func @transform_5(%arg0: i32) -> (i32, i32) {
    %c0_i32 = arith.constant 0 : i32
    %c0_i32_0 = arith.constant 0 : i32
    %c0_i32_1 = arith.constant 0 : i32
    return %c0_i32, %c0_i32_0 : i32, i32
  }
  func.func @transform_6(%arg0: i32) -> (i32, i32) {
    %c0_i32 = arith.constant 0 : i32
    %c0_i32_0 = arith.constant 0 : i32
    %c0_i32_1 = arith.constant 0 : i32
    return %c0_i32, %c0_i32_0 : i32, i32
  }
  func.func @transform_7(%arg0: i32) -> (i32, i32) {
    %c0_i32 = arith.constant 0 : i32
    %c0_i32_0 = arith.constant 0 : i32
    %c0_i32_1 = arith.constant 0 : i32
    return %c0_i32, %c0_i32_0 : i32, i32
  }
  func.func @transform_8(%arg0: i32) -> (i32, i32) {
    %c0_i32 = arith.constant 0 : i32
    %c0_i32_0 = arith.constant 0 : i32
    %c0_i32_1 = arith.constant 0 : i32
    return %c0_i32, %c0_i32_0 : i32, i32
  }
  func.func @transform_9(%arg0: i32) -> (i32, i32) {
    %c0_i32 = arith.constant 0 : i32
    %c0_i32_0 = arith.constant 0 : i32
    return %arg0, %c0_i32 : i32, i32
  }
}

</mosaic_0001>

<bundles_post_ra>
// kernel: tpu_custom_call.1
= control target key start
LH: loop header
LB: loop body
LE: loop exit
PB: predicated region body
PF: predicated region fallthrough
CT: control target
= control target key end

     0   :  { %s1826_s0 = inlined_call_operand.hbm [shape: f32[16,256], index: 0, kind: input, shape index: {}]   ;;  %s1827_s1 = inlined_call_operand.hbm [shape: bf16[128,128], index: 1, kind: input, shape index: {}]   ;;  %s1828_s2 = inlined_call_operand.vmem [shape: f32[1,128], index: 2, kind: input, shape index: {}]   ;;  %s1829_s3 = inlined_call_operand.hbm [shape: bf16[128,128], index: 3, kind: input, shape index: {}]   ;;  %s1830_s4 = inlined_call_operand.vmem [shape: f32[1,128], index: 4, kind: input, shape index: {}]   ;;  %s1831_s5 = inlined_call_operand.hbm [shape: bf16[128,128], index: 5, kind: input, shape index: {}]   ;;  %s1832_s6 = inlined_call_operand.vmem [shape: f32[1,128], index: 6, kind: input, shape index: {}]   ;;  %s1833_s7 = inlined_call_operand.hbm [shape: bf16[128,128], index: 7, kind: input, shape index: {}]   ;;  %s1834_s8 = inlined_call_operand.vmem [shape: f32[1,128], index: 8, kind: input, shape index: {}]   ;;  %s1835_s9 = inlined_call_operand.hbm [shape: f32[16,256], index: 9, kind: output, shape index: {}]  }
   0x1   :  { %1836 = sst [smem:[#allocation16_spill]] %s1827_s1 }
   0x2   :  { %1837 = sst [smem:[#allocation17_spill]] %s1829_s3 }
   0x3   :  { %1838 = sst [smem:[#allocation18_spill]] %s1831_s5 }
   0x4   :  { %1839 = sst [smem:[#allocation19_spill]] %s1833_s7 }
   0x5   :  { %14 = vsyncpa [#allocation3], 0 }
   0x6   :  { %16 = vsyncpa [#allocation3 + $0x1], 0 }
   0x7   :  { %17 = vsyncpa [#allocation6], 0 }
   0x8   :  { %18 = vsyncpa [#allocation9], 0 }
   0x9   :  { %19 = vsyncpa [#allocation4], 0 }
   0xa   :  { %21 = vsyncpa [#allocation4 + $0x1], 0  ;;  %s1605_s30 = smov 0   ;;  %s1607_s10 = smov 0  }
   0xb   :  { %s1609_s11 = smov 0   ;;  %s1611_s12 = smov 0  }
   0xc LB: > { %s1840_s1 = sld [smem:[#allocation16_spill]]  ;;  %s1629_s16 = sadd.s32 4294967295, %s1546_s12   ;;  %s1546_s12 = sphi %s1611_s12, %s1855_s12   ;;  %s1542_s11 = sphi %s1609_s11, %s1854_s11   ;;  %s1538_s10 = sphi %s1607_s10, %s1853_s10   ;;  %s1534_s30 = sphi %s1605_s30, %s1852_s30  }
   0xd   : > { %p1033_p0 = scmp.ge.s32.totalorder %s1546_s12, 1  ;;  %p48_p1 = scmp.eq.s32.totalorder %s1629_s16, 0 }
   0xe   : > { %p252_p2 = scmp.lt.s32.totalorder %s1546_s12, 3  ;;  %s1548_s18 = smov [#allocation5]  }
   0xf   : > { %s265_s19 = sshll.u32 %s1548_s18, 4  ;;  %s1842_s5 = sld [smem:[#allocation18_spill]]  ;;  %s266_s19 = int_to_ptr.vmem [resolvable:$true] %s265_s19 }
  0x10   : > { %p1634_p3 = pnand %p1033_p0, %p252_p2  ;;  %s1844_s3 = sld [smem:[#allocation17_spill]] }
  0x11   : > { %s1549_s27 = smov [#allocation8]   ;;  %s1550_s29 = smov 64  }
  0x12   : > { %s263_s15 = sshll.u32 %s1840_s1, 4  ;;  %p1236_p4 = pneg %p1634_p3  ;;  %s264_s15 = int_to_ptr.hbm [resolvable:$true] %s263_s15 }
  0x13   : > { %s299_s28 = sshll.u32 %s1549_s27, 4  ;;  %s1551_s13 = smov 4   ;;  %s300_s28 = int_to_ptr.vmem [resolvable:$true] %s299_s28 }
  0x14   : > { %p1646_p6 = pnand %p1236_p4, %p48_p1  ;;  %s1845_s7 = sld [smem:[#allocation19_spill]] }
  0x15   : > { %s297_s22 = sshll.u32 %s1842_s5, 4  ;;  %s1552_s21 = smov [#allocation7]   ;;  %s298_s22 = int_to_ptr.hbm [resolvable:$true] %s297_s22 }
  0x16   : > { %s280_s26 = sshll.u32 %s1844_s3, 4  ;;  %s282_s24 = sshll.u32 %s1552_s21, 4  ;;  %s281_s26 = int_to_ptr.hbm [resolvable:$true] %s280_s26  ;;  %s283_s24 = int_to_ptr.vmem [resolvable:$true] %s282_s24 }
  0x17   : > { %1239 = dma.hbm_to_vmem [thread:$0]  (!%p1646_p6), %s264_s15, 1024, %s266_s19, [#allocation6], %s1550_s29, %s1550_s29, %s1551_s13  }
  0x18   : > { %1245 = dma.hbm_to_vmem [thread:$0]  (!%p1646_p6), %s298_s22, 1024, %s300_s28, [#allocation9], %s1550_s29, %s1550_s29, %s1551_s13  }
  0x19   : > { %1242 = dma.hbm_to_vmem [thread:$0]  (!%p1646_p6), %s281_s26, 1024, %s283_s24, [#allocation6], %s1550_s29, %s1550_s29, %s1551_s13  }
  0x1a   : > { %s314_s20 = sshll.u32 %s1845_s7, 4  ;;  %s1553_s15 = smov [#allocation10]   ;;  %s315_s20 = int_to_ptr.hbm [resolvable:$true] %s314_s20 }
  0x1b   : > { %s316_s19 = sshll.u32 %s1553_s15, 4  ;;  %s1032_s22 = sadd.s32 4294967294, %s1546_s12   ;;  %s317_s19 = int_to_ptr.vmem [resolvable:$true] %s316_s19 }
  0x1c   : > { %1248 = dma.hbm_to_vmem [thread:$0]  (!%p1646_p6), %s315_s20, 1024, %s317_s19, [#allocation9], %s1550_s29, %s1550_s29, %s1551_s13  }
  0x1d   : > { %s1666_s25 = sadd.s32 1, %s1546_s12   ;;  %s34_s28 = sadd.s32 1, %s1542_s11 }
  0x1e   : > { %s31_s27 = ssub.s32 %s1546_s12, %s1666_s25  ;;  %p41_p8 = scmp.ne.s32.totalorder %s1542_s11, %s1538_s10 }
  0x1f   : > { %p32_p7 = scmp.eq.s32.totalorder %s31_s27, 0  ;;  %p42_p9 = scmp.eq.s32.totalorder %s1546_s12, 0 }
  0x20   : > { %p47_p10 = scmp.ne.s32.totalorder %s1538_s10, %s1534_s30  ;;  %p239_p13 = scmp.eq.s32.totalorder %s1629_s16, 1 }
  0x21   : > { %s1677_s26 = scalar_select %p32_p7, %s1542_s11, %s34_s28  }
  0x22   : > { %p1679_p11 = por %p42_p9, %p41_p8  ;;  %p1685_p12 = por %p48_p1, %p47_p10 }
  0x23   : > { %p245_p0 = scmp.eq.s32.totalorder %s1032_s22, 1  ;;  %p1261_p2 = scmp.lt.s32.totalorder %s1546_s12, 2 }
  0x24   : > { %s333_s29 = sand.u32 1, %s1542_s11   ;;  %p1692_p4 = por %p239_p13, %p41_p8 }
  0x25   : > { %p1696_p6 = por %p245_p0, %p47_p10  ;;  %s1039_s20 = sshll.u32 %s333_s29, 4 }
  0x26   : > { %s1182_s21 = sshll.u32 %s1546_s12, 4  ;;  %s337_s27 = scalar_lea.vmem [#allocation2], %s1039_s20 }
  0x27   : > { %s342_s19 = scalar_lea.hbm %s1826_s0, %s1182_s21  ;;  %s346_s28 = sshll.u32 %s337_s27, 4  ;;  %s347_s28 = int_to_ptr.vmem [resolvable:$true] %s346_s28 }
  0x28   : > { %s344_s1 = sshll.u32 %s342_s19, 4  ;;  %p1706_p7 = pnand %p1261_p2, %p1679_p11  ;;  %s345_s1 = int_to_ptr.hbm [resolvable:$true] %s344_s1 }
  0x29   : > { %s334_s3 = scalar_lea.sflag [#allocation3], %s333_s29  ;;  %s1442_s5 = sshra.s32 %s345_s1, 4  ;;  %s1443_s5 = int_to_ptr.hbm [resolvable:$true] %s1442_s5 }
  0x2a   : > { %s1444_s7 = scalar_lea.hbm %s1443_s5, 16  ;;  %p1446_p9 = pneg %p1706_p7 }
  0x2b   : > { %p1445_p8 = scmp.ne.s32.totalorder %s1443_s5, %s1444_s7  ;;  %s1449_s24 = scalar_lea.hbm %s1826_s0, 32 }
  0x2c   : > { %p1450_p11 = scmp.lt.s32.totalorder %s1443_s5, %s1826_s0  ;;  %p1451_p0 = scmp.lt.s32.totalorder %s1449_s24, %s1444_s7 }
  0x2d   : > { %p1447_p10 = pnand %p1446_p9, %p1445_p8 }
  0x2e   : > { %p1452_p2 = por %p1451_p0, %p1450_p11 }
  0x2f   : > { %p1448_p13 = pneg %p1447_p10 }
  0x31   : > { %p1453_p5 = pnand %p1452_p2, %p1448_p13 }
  0x33   : > { %1456 = shalt.err (!%p1453_p5)
}
  0x34   : > { %1252 = dma.hbm_to_vmem [thread:$0]  (!%p1706_p7), %s345_s1, 256, %s347_s28, %s334_s3  }
  0x35   : > { %355 = sbr.rel (%p1634_p3) target bundleno = 883 (0x373), region = 56  ;;  %s1723_s29 = sand.u32 (!%p1634_p3), 1, %s1538_s10  }
  0x36   : > { %s1043_s19 = sshll.u32 (!%p1634_p3), %s1723_s29, 4  ;;  %s358_s27 = scalar_lea.sflag (!%p1634_p3), [#allocation3], %s1723_s29 }
  0x37   : > { %s1729_s5 = scalar_lea.vmem (!%p1634_p3), [#allocation2], %s1043_s19 }
  0x3a   : > { %1517 = dma.done.wait (%p1685_p12), %s358_s27, 256  }
  0x3b   : > { %1519 = vsyncadd (%p1685_p12), %s358_s27, 4294967040 }
  0x3c   : > { %1521 = dma.done.wait (%p48_p1), [#allocation6], 2048  }
  0x3d   : > { %1523 = vsyncadd (%p48_p1), [#allocation6], 4294965248 }
  0x3e   : > { %1525 = dma.done.wait (%p48_p1), [#allocation9], 2048  }
  0x3f   : > { %1527 = vsyncadd (%p48_p1), [#allocation9], 4294965248  ;;  %v1190_v0 = vld [vmem:[#allocation5 + $0x38] sm:$0xff]  ;;  %v1189_v1 = vld [vmem:[#allocation5 + $0x30] sm:$0xff]  ;;  %v1554_v34 = vmov 1065369472  }
  0x40   : > { %488 = vmatpush.bf16.msra.mxu0 %v1190_v0  ;;  %v1188_v2 = vld [vmem:[#allocation5 + $0x28] sm:$0xff]  ;;  %v1187_v3 = vld [vmem:[#allocation5 + $0x20] sm:$0xff]  ;;  %v1186_v4 = vld [vmem:[#allocation5 + $0x18] sm:$0xff]  ;;  %v1757_v35 = vunpack.c.h.bf16 %v1554_v34  ;;  %v1759_v36 = vunpack.c.l.bf16 %v1554_v34  ;;  %s1771_s23 = scalar_lea.vmem [#allocation11], %s1043_s19  ;;  %s1215_s20 = sshll.u32 %s1629_s16, 4 }
  0x41   : > { %v1185_v5 = vld [vmem:[#allocation5 + $0x10] sm:$0xff]  ;;  %v1184_v6 = vld [vmem:[#allocation5 + $0x8] sm:$0xff]  ;;  %v1183_v7 = vld [vmem:[#allocation5] sm:$0xff]  ;;  %s919_s19 = scalar_lea.hbm %s1835_s9, %s1215_s20  ;;  %s921_s27 = sshll.u32 %s1771_s23, 4  ;;  %s922_s27 = int_to_ptr.vmem [resolvable:$true] %s921_s27 }
  0x42   : > { %v1744_v8 = vld [vmem:[%s1729_s5 + $0x8] sm:$0xff]  ;;  %v1306_v10 = vld [vmem:[%s1828_s2] ss:$0 sm:$0xff]  ;;  %v1197_v19 = vld [vmem:[#allocation7 + $0x30] sm:$0xff]  ;;  %s908_s1 = scalar_lea.sflag [#allocation4], %s1723_s29  ;;  %s1492_s28 = scalar_lea.hbm %s1835_s9, 32 }
  0x43   : > { %v419_v9 = vpack.c.bf16 %v1744_v8, %v1744_v8  ;;  %v1198_v16 = vld [vmem:[#allocation7 + $0x38] sm:$0xff]  ;;  %v1196_v22 = vld [vmem:[#allocation7 + $0x28] sm:$0xff]  ;;  %v1195_v25 = vld [vmem:[#allocation7 + $0x20] sm:$0xff] }
  0x44   : > { %489 = vmatpush.bf16.msra.mxu0 %v1189_v1  ;;  %648 = vmatpush.bf16.msra.mxu1 %v1198_v16  ;;  %v1194_v28 = vld [vmem:[#allocation7 + $0x18] sm:$0xff]  ;;  %v1193_v32 = vld [vmem:[#allocation7 + $0x10] sm:$0xff]  ;;  %v1192_v33 = vld [vmem:[#allocation7 + $0x8] sm:$0xff] }
  0x45   : > { %v1191_v38 = vld [vmem:[#allocation7] sm:$0xff] }
  0x48   : > { %490 = vmatpush.bf16.msra.mxu0 %v1188_v2  ;;  %649 = vmatpush.bf16.msra.mxu1 %v1197_v19 }
  0x4c   : > { %491 = vmatpush.bf16.msra.mxu0 %v1187_v3  ;;  %650 = vmatpush.bf16.msra.mxu1 %v1196_v22  ;;  %v1206_v22 = vld [vmem:[#allocation8 + $0x38] sm:$0xff] }
  0x4d   : > { %733 = vmatpush.bf16.msra.mxu2 %v1206_v22 }
  0x50   : > { %492 = vmatpush.bf16.msra.mxu0 %v1186_v4  ;;  %651 = vmatpush.bf16.msra.mxu1 %v1195_v25 }
  0x54   : > { %493 = vmatpush.bf16.msra.mxu0 %v1185_v5  ;;  %652 = vmatpush.bf16.msra.mxu1 %v1194_v28  ;;  %v1204_v28 = vld [vmem:[#allocation8 + $0x28] sm:$0xff] }
  0x58   : > { %494 = vmatpush.bf16.msra.mxu0 %v1184_v6  ;;  %653 = vmatpush.bf16.msra.mxu1 %v1193_v32 }
  0x5c   : > { %495 = vmatpush.bf16.msra.mxu0 %v1183_v7  ;;  %654 = vmatpush.bf16.msra.mxu1 %v1192_v33 }
  0x5f   : > { %496 = vmatmul.bf16.vlgmr.msra.gmra.mxu0 %v419_v9 }
  0x60   : > { %655 = vmatpush.bf16.msra.mxu1 %v1191_v38 }
  0xdc   : > { %v497_v11 = vpop.f32.mrf.mxu0 }
  0xdd   : > { %v498_v12 = vadd.f32 %v1306_v10, %v497_v11 }
  0xdf   : > { %v501_v13 = vpack.c.bf16 %v498_v12, %v498_v12 }
  0xe1   : > { %v1751_v14 = vunpack.c.l.bf16 %v501_v13 }
  0xe3   : > { %v503_v15 = vmul.f32 0.70703125, %v1751_v14 }
  0xe4   : > { %v499_v17 = vpop.f32.mrf.mxu0 }
  0xe5   : > { %v1754_v18 = vpack.c.bf16 %v503_v15, %v503_v15 }
  0xe7   : > { %v505_v20 = vand.u32 2147450879, %v1754_v18 }
  0xe9   : > { %v506_v21 = vunpack.c.l.bf16 %v505_v20 }
  0xeb   : > { %v507_v23 = vmul.f32 0.328125, %v506_v21  ;;  %v548_v50 = vmul.f32 %v506_v21, %v506_v21 }
  0xed   : > { %v508_v24 = vpack.c.bf16 %v507_v23, %v507_v23  ;;  %v549_v53 = vpack.c.bf16 %v548_v50, %v548_v50  ;;  %v661_v50 = vld [vmem:[%s1729_s5] sm:$0xff]  ;;  %s923_s5 = sshll.u32 %s919_s19, 4  ;;  %s924_s5 = int_to_ptr.hbm [resolvable:$true] %s923_s5 }
  0xee   : > { %s1486_s16 = sshra.s32 %s924_s5, 4  ;;  %s1487_s16 = int_to_ptr.hbm [resolvable:$true] %s1486_s16 }
  0xef   : > { %v509_v26 = vunpack.c.l.bf16 %v508_v24  ;;  %v550_v56 = vunpack.c.l.bf16 %v549_v53  ;;  %v1205_v24 = vld [vmem:[#allocation8 + $0x30] sm:$0xff]  ;;  %s1488_s3 = scalar_lea.hbm %s1487_s16, 16  ;;  %p1493_p12 = scmp.lt.s32.totalorder %s1487_s16, %s1835_s9 }
  0xf0   : > { %734 = vmatpush.bf16.msra.mxu2 %v1205_v24  ;;  %p1489_p1 = scmp.ne.s32.totalorder %s1487_s16, %s1488_s3  ;;  %p1494_p7 = scmp.lt.s32.totalorder %s1492_s28, %s1488_s3 }
  0xf1   : > { %v510_v27 = vadd.f32 1.0, %v509_v26  ;;  %v551_v59 = vsub.f32 0.0, %v550_v56  ;;  %v564_v26 = vunpack.c.l.bf16 %v1754_v18 }
  0xf2   : > { %p1490_p3 = pnand %p1489_p1, %p1692_p4  ;;  %p1495_p8 = por %p1494_p7, %p1493_p12 }
  0xf3   : > { %v511_v29 = vpack.c.bf16 %v510_v27, %v510_v27  ;;  %v552_v62 = vpack.c.bf16 %v551_v59, %v551_v59  ;;  %vm565_vm0 = vcmp.ge.f32.partialorder %v564_v26, 0.0 }
  0xf4   : > { %735 = vmatpush.bf16.msra.mxu2 %v1204_v28  ;;  %vm569_vm1 = vmpackc.low %vm565_vm0, %vm565_vm0  ;;  %p1491_p5 = pneg %p1490_p3 }
  0xf5   : > { %v514_v30 = vunpack.c.h.bf16 %v511_v29  ;;  %v515_v31 = vunpack.c.l.bf16 %v511_v29  ;;  %v553_v1 = vunpack.c.l.bf16 %v552_v62 }
  0xf6   : > { %p1496_p9 = pnand %p1495_p8, %p1491_p5 }
  0xf7   : > { %1310 = vrcp.f32 %v514_v30  ;;  %v554_v4 = vmul.f32 1.442695, %v553_v1 }
  0xf8   : > { %1312 = vrcp.f32 %v515_v31  ;;  %v1203_v31 = vld [vmem:[#allocation8 + $0x20] sm:$0xff] }
  0xf9   : > { %1314 = vpow2.f32 %v554_v4  ;;  %736 = vmatpush.bf16.msra.mxu2 %v1203_v31 }
  0xfd   : > { %v1311_v37 = vpop.eup %1310 }
  0xfe   : > { %v1313_v39 = vpop.eup %1312  ;;  %v517_v40 = vmul.f32 %v1311_v37, %v1757_v35  ;;  %v1202_v37 = vld [vmem:[#allocation8 + $0x18] sm:$0xff] }
  0xff   : > { %v519_v41 = vmul.f32 %v1313_v39, %v1759_v36  ;;  %v1315_v11 = vpop.eup %1314  ;;  %737 = vmatpush.bf16.msra.mxu2 %v1202_v37 }
 0x100   : > { %v556_v13 = vpack.c.bf16 %v1315_v11, %v1315_v11 }
 0x101   : > { %v520_v42 = vpack.c.bf16 %v517_v40, %v519_v41  ;;  %v1201_v40 = vld [vmem:[#allocation8 + $0x10] sm:$0xff] }
 0x102   : > { %v558_v17 = vunpack.c.l.bf16 %v556_v13  ;;  %v1209_v13 = vld [vmem:[#allocation10 + $0x10] sm:$0xff] }
 0x103   : > { %v521_v43 = vunpack.c.l.bf16 %v520_v42  ;;  %738 = vmatpush.bf16.msra.mxu2 %v1201_v40 }
 0x105   : > { %v522_v44 = vmul.f32 1.0625, %v521_v43 }
 0x107   : > { %v523_v45 = vpack.c.bf16 %v522_v44, %v522_v44 }
 0x109   : > { %v524_v46 = vunpack.c.l.bf16 %v523_v45 }
 0x10b   : > { %v525_v47 = vadd.f32 -1.453125, %v524_v46  ;;  %v1200_v46 = vld [vmem:[#allocation8 + $0x8] sm:$0xff] }
 0x10c   : > { %739 = vmatpush.bf16.msra.mxu2 %v1200_v46 }
 0x10d   : > { %v526_v48 = vpack.c.bf16 %v525_v47, %v525_v47  ;;  %v1199_v47 = vld [vmem:[#allocation8] sm:$0xff] }
 0x10f   : > { %v527_v49 = vunpack.c.l.bf16 %v526_v48  ;;  %v1307_v48 = vld [vmem:[%s1830_s4] ss:$0 sm:$0xff] }
 0x110   : > { %740 = vmatpush.bf16.msra.mxu2 %v1199_v47 }
 0x111   : > { %v528_v51 = vmul.f32 %v527_v49, %v521_v43 }
 0x113   : > { %v529_v52 = vpack.c.bf16 %v528_v51, %v528_v51 }
 0x115   : > { %v530_v54 = vunpack.c.l.bf16 %v529_v52 }
 0x117   : > { %v531_v55 = vadd.f32 1.421875, %v530_v54  ;;  %v1308_v54 = vld [vmem:[%s1832_s6] ss:$0 sm:$0xff] }
 0x119   : > { %v532_v57 = vpack.c.bf16 %v531_v55, %v531_v55 }
 0x11b   : > { %v533_v58 = vunpack.c.l.bf16 %v532_v57 }
 0x11d   : > { %v534_v60 = vmul.f32 %v533_v58, %v521_v43 }
 0x11f   : > { %v535_v61 = vpack.c.bf16 %v534_v60, %v534_v60  ;;  %v1214_v60 = vld [vmem:[#allocation10 + $0x38] sm:$0xff] }
 0x120   : > { %891 = vmatpush.bf16.msra.mxu3 %v1214_v60 }
 0x121   : > { %v536_v63 = vunpack.c.l.bf16 %v535_v61 }
 0x123   : > { %v537_v0 = vadd.f32 -0.28515625, %v536_v63  ;;  %v1213_v63 = vld [vmem:[#allocation10 + $0x30] sm:$0xff] }
 0x124   : > { %892 = vmatpush.bf16.msra.mxu3 %v1213_v63 }
 0x125   : > { %v538_v2 = vpack.c.bf16 %v537_v0, %v537_v0 }
 0x127   : > { %v539_v3 = vunpack.c.l.bf16 %v538_v2  ;;  %v1212_v2 = vld [vmem:[#allocation10 + $0x28] sm:$0xff] }
 0x128   : > { %893 = vmatpush.bf16.msra.mxu3 %v1212_v2 }
 0x129   : > { %v540_v5 = vmul.f32 %v539_v3, %v521_v43 }
 0x12b   : > { %v541_v6 = vpack.c.bf16 %v540_v5, %v540_v5  ;;  %v1211_v5 = vld [vmem:[#allocation10 + $0x20] sm:$0xff] }
 0x12c   : > { %894 = vmatpush.bf16.msra.mxu3 %v1211_v5 }
 0x12d   : > { %v542_v7 = vunpack.c.l.bf16 %v541_v6 }
 0x12f   : > { %v543_v9 = vadd.f32 0.25390625, %v542_v7 }
 0x131   : > { %v544_v10 = vpack.c.bf16 %v543_v9, %v543_v9  ;;  %v1210_v9 = vld [vmem:[#allocation10 + $0x18] sm:$0xff] }
 0x132   : > { %895 = vmatpush.bf16.msra.mxu3 %v1210_v9 }
 0x133   : > { %v545_v12 = vunpack.c.l.bf16 %v544_v10 }
 0x135   : > { %v546_v15 = vmul.f32 %v545_v12, %v521_v43 }
 0x136   : > { %896 = vmatpush.bf16.msra.mxu3 %v1209_v13 }
 0x137   : > { %v547_v16 = vpack.c.bf16 %v546_v15, %v546_v15  ;;  %v1208_v15 = vld [vmem:[#allocation10 + $0x8] sm:$0xff] }
 0x139   : > { %v557_v19 = vunpack.c.l.bf16 %v547_v16 }
 0x13a   : > { %897 = vmatpush.bf16.msra.mxu3 %v1208_v15 }
 0x13b   : > { %v559_v20 = vmul.f32 %v558_v17, %v557_v19  ;;  %v1207_v17 = vld [vmem:[#allocation10] sm:$0xff] }
 0x13d   : > { %v560_v21 = vpack.c.bf16 %v559_v20, %v559_v20 }
 0x13e   : > { %898 = vmatpush.bf16.msra.mxu3 %v1207_v17  ;;  %v1309_v17 = vld [vmem:[%s1834_s8] ss:$0 sm:$0xff] }
 0x13f   : > { %v561_v23 = vunpack.c.l.bf16 %v560_v21 }
 0x141   : > { %v562_v25 = vsub.f32 1.0, %v561_v23 }
 0x143   : > { %v563_v27 = vpack.c.bf16 %v562_v25, %v562_v25 }
 0x145   : > { %v566_v29 = vunpack.c.l.bf16 %v563_v27 }
 0x147   : > { %v567_v30 = vsub.f32 0.0, %v566_v29 }
 0x149   : > { %v568_v32 = vpack.c.bf16 %v567_v30, %v567_v30 }
 0x14b   : > { %v570_v33 = vsel %vm569_vm1, %v563_v27, %v568_v32 }
 0x14c   : > { %v571_v34 = vunpack.c.l.bf16 %v570_v33 }
 0x14e   : > { %v572_v38 = vadd.f32 1.0, %v571_v34 }
 0x150   : > { %v573_v39 = vpack.c.bf16 %v572_v38, %v572_v38 }
 0x152   : > { %v574_v18 = vunpack.c.l.bf16 %v573_v39 }
 0x154   : > { %v575_v41 = vmul.f32 0.5, %v574_v18 }
 0x156   : > { %v576_v42 = vpack.c.bf16 %v575_v41, %v575_v41 }
 0x158   : > { %v577_v43 = vunpack.c.l.bf16 %v576_v42 }
 0x15a   : > { %v578_v44 = vmul.f32 %v577_v43, %v1751_v14 }
 0x15c   : > { %v579_v45 = vpack.c.bf16 %v578_v44, %v578_v44 }
 0x15e   : > { %656 = vmatmul.bf16.vlgmr.msra.gmra.mxu1 %v579_v45 }
 0x1db   : > { %v657_v49 = vpop.f32.mrf.mxu1 }
 0x1dc   : > { %v658_v51 = vadd.f32 %v1307_v48, %v657_v49 }
 0x1de   : > { %v662_v52 = vadd.f32 %v661_v50, %v658_v51 }
 0x1e0   : > { %663 = vst [vmem:[%s1771_s23] sm:$0xff] %v662_v52  ;;  %v664_v14 = vpack.c.bf16 %v662_v52, %v662_v52 }
 0x1e2   : > { %741 = vmatmul.bf16.vlgmr.msra.gmra.mxu2 %v664_v14 }
 0x1e3   : > { %v659_v53 = vpop.f32.mrf.mxu1 }
 0x265   : > { %v742_v55 = vpop.f32.mrf.mxu2 }
 0x266   : > { %v743_v56 = vadd.f32 %v1308_v54, %v742_v55 }
 0x268   : > { %v746_v57 = vpack.c.bf16 %v743_v56, %v743_v56 }
 0x26a   : > { %v1777_v58 = vunpack.c.l.bf16 %v746_v57 }
 0x26c   : > { %v748_v59 = vmul.f32 0.70703125, %v1777_v58 }
 0x26d   : > { %v744_v61 = vpop.f32.mrf.mxu2 }
 0x26e   : > { %v1780_v62 = vpack.c.bf16 %v748_v59, %v748_v59 }
 0x270   : > { %v750_v0 = vand.u32 2147450879, %v1780_v62 }
 0x272   : > { %v751_v1 = vunpack.c.l.bf16 %v750_v0 }
 0x274   : > { %v752_v3 = vmul.f32 0.328125, %v751_v1  ;;  %v791_v30 = vmul.f32 %v751_v1, %v751_v1  ;;  %v807_v1 = vunpack.c.l.bf16 %v1780_v62 }
 0x276   : > { %v753_v4 = vpack.c.bf16 %v752_v3, %v752_v3  ;;  %v792_v33 = vpack.c.bf16 %v791_v30, %v791_v30  ;;  %vm808_vm2 = vcmp.ge.f32.partialorder %v807_v1, 0.0 }
 0x277   : > { %vm812_vm3 = vmpackc.low %vm808_vm2, %vm808_vm2 }
 0x278   : > { %v754_v6 = vunpack.c.l.bf16 %v753_v4  ;;  %v793_v38 = vunpack.c.l.bf16 %v792_v33 }
 0x27a   : > { %v755_v7 = vadd.f32 1.0, %v754_v6  ;;  %v794_v40 = vsub.f32 0.0, %v793_v38 }
 0x27c   : > { %v756_v10 = vpack.c.bf16 %v755_v7, %v755_v7  ;;  %v795_v41 = vpack.c.bf16 %v794_v40, %v794_v40 }
 0x27e   : > { %v757_v11 = vunpack.c.h.bf16 %v756_v10  ;;  %v758_v12 = vunpack.c.l.bf16 %v756_v10  ;;  %v796_v44 = vunpack.c.l.bf16 %v795_v41 }
 0x280   : > { %1316 = vrcp.f32 %v757_v11  ;;  %v797_v47 = vmul.f32 1.442695, %v796_v44 }
 0x281   : > { %1318 = vrcp.f32 %v758_v12 }
 0x282   : > { %1320 = vpow2.f32 %v797_v47 }
 0x286   : > { %v1317_v16 = vpop.eup %1316 }
 0x287   : > { %v1319_v19 = vpop.eup %1318  ;;  %v760_v20 = vmul.f32 %v1317_v16, %v1757_v35 }
 0x288   : > { %v762_v21 = vmul.f32 %v1319_v19, %v1759_v36  ;;  %v1321_v14 = vpop.eup %1320 }
 0x289   : > { %v799_v54 = vpack.c.bf16 %v1321_v14, %v1321_v14 }
 0x28a   : > { %v763_v22 = vpack.c.bf16 %v760_v20, %v762_v21 }
 0x28b   : > { %v801_v57 = vunpack.c.l.bf16 %v799_v54 }
 0x28c   : > { %v764_v23 = vunpack.c.l.bf16 %v763_v22 }
 0x28e   : > { %v765_v24 = vmul.f32 1.0625, %v764_v23 }
 0x290   : > { %v766_v25 = vpack.c.bf16 %v765_v24, %v765_v24 }
 0x292   : > { %v767_v26 = vunpack.c.l.bf16 %v766_v25 }
 0x294   : > { %v768_v27 = vadd.f32 -1.453125, %v767_v26 }
 0x296   : > { %v769_v28 = vpack.c.bf16 %v768_v27, %v768_v27 }
 0x298   : > { %v770_v29 = vunpack.c.l.bf16 %v769_v28 }
 0x29a   : > { %v771_v31 = vmul.f32 %v770_v29, %v764_v23 }
 0x29c   : > { %v772_v32 = vpack.c.bf16 %v771_v31, %v771_v31 }
 0x29e   : > { %v773_v34 = vunpack.c.l.bf16 %v772_v32 }
 0x2a0   : > { %v774_v37 = vadd.f32 1.421875, %v773_v34 }
 0x2a2   : > { %v775_v39 = vpack.c.bf16 %v774_v37, %v774_v37 }
 0x2a4   : > { %v776_v35 = vunpack.c.l.bf16 %v775_v39 }
 0x2a6   : > { %v777_v36 = vmul.f32 %v776_v35, %v764_v23 }
 0x2a8   : > { %v778_v18 = vpack.c.bf16 %v777_v36, %v777_v36 }
 0x2aa   : > { %v779_v42 = vunpack.c.l.bf16 %v778_v18 }
 0x2ac   : > { %v780_v43 = vadd.f32 -0.28515625, %v779_v42 }
 0x2ae   : > { %v781_v45 = vpack.c.bf16 %v780_v43, %v780_v43 }
 0x2b0   : > { %v782_v46 = vunpack.c.l.bf16 %v781_v45 }
 0x2b2   : > { %v783_v48 = vmul.f32 %v782_v46, %v764_v23 }
 0x2b4   : > { %v784_v49 = vpack.c.bf16 %v783_v48, %v783_v48 }
 0x2b6   : > { %v785_v50 = vunpack.c.l.bf16 %v784_v49 }
 0x2b8   : > { %v786_v51 = vadd.f32 0.25390625, %v785_v50 }
 0x2ba   : > { %v787_v52 = vpack.c.bf16 %v786_v51, %v786_v51 }
 0x2bc   : > { %v788_v53 = vunpack.c.l.bf16 %v787_v52 }
 0x2be   : > { %v789_v55 = vmul.f32 %v788_v53, %v764_v23 }
 0x2c0   : > { %v790_v56 = vpack.c.bf16 %v789_v55, %v789_v55 }
 0x2c2   : > { %v800_v59 = vunpack.c.l.bf16 %v790_v56 }
 0x2c4   : > { %v802_v60 = vmul.f32 %v801_v57, %v800_v59 }
 0x2c6   : > { %v803_v61 = vpack.c.bf16 %v802_v60, %v802_v60 }
 0x2c8   : > { %v804_v63 = vunpack.c.l.bf16 %v803_v61 }
 0x2ca   : > { %v805_v0 = vsub.f32 1.0, %v804_v63 }
 0x2cc   : > { %v806_v2 = vpack.c.bf16 %v805_v0, %v805_v0 }
 0x2ce   : > { %v809_v3 = vunpack.c.l.bf16 %v806_v2 }
 0x2d0   : > { %v810_v4 = vsub.f32 0.0, %v809_v3 }
 0x2d2   : > { %v811_v5 = vpack.c.bf16 %v810_v4, %v810_v4 }
 0x2d4   : > { %v813_v6 = vsel %vm812_vm3, %v806_v2, %v811_v5 }
 0x2d5   : > { %v814_v7 = vunpack.c.l.bf16 %v813_v6 }
 0x2d7   : > { %v815_v9 = vadd.f32 1.0, %v814_v7 }
 0x2d9   : > { %v816_v10 = vpack.c.bf16 %v815_v9, %v815_v9 }
 0x2db   : > { %v817_v11 = vunpack.c.l.bf16 %v816_v10 }
 0x2dd   : > { %v818_v12 = vmul.f32 0.5, %v817_v11 }
 0x2df   : > { %v819_v13 = vpack.c.bf16 %v818_v12, %v818_v12 }
 0x2e1   : > { %v820_v15 = vunpack.c.l.bf16 %v819_v13 }
 0x2e3   : > { %v821_v62 = vmul.f32 %v820_v15, %v1777_v58 }
 0x2e5   : > { %v822_v16 = vpack.c.bf16 %v821_v62, %v821_v62 }
 0x2e7   : > { %899 = vmatmul.bf16.vlgmr.msra.gmra.mxu3 %v822_v16 }
 0x36a   : > { %v900_v19 = vpop.f32.mrf.mxu3 }
 0x36b   : > { %v901_v20 = vadd.f32 %v1309_v17, %v900_v19 }
 0x36d   : > { %v905_v21 = vadd.f32 %v901_v20, %v1744_v8 }
 0x36f   : > { %906 = vst [vmem:[%s1771_s23 + $0x8] sm:$0xff] %v905_v21 }
 0x370   : > { %1499 = shalt.err (!%p1496_p9)
}
 0x371   : > { %1234 = dma.vmem_to_hbm [thread:$0]  (%p1692_p4), %s922_s27, 256, %s924_s5, %s908_s1  }
 0x372   : > { %v902_v8 = vpop.f32.mrf.mxu3 }
 0x373 PF: > { %s935_s29 = sand.u32 1, %s1534_s30   ;;  %p1851_p10 = scmp.ge.s32.totalorder %s1546_s12, 2 }
 0x374   : > { %s936_s23 = scalar_lea.sflag [#allocation4], %s935_s29 }
 0x375   : > { %p1254_p13 = pnand %p1851_p10, %p1696_p6 }
 0x377   : > { %p1255_p11 = pneg %p1254_p13 }
 0x379   : > { %1529 = dma.done.wait (%p1255_p11), %s936_s23, 256  }
 0x37a   : > { %1531 = vsyncadd (%p1255_p11), %s936_s23, 4294967040  ;;  %p24_p0 = scmp.ge.s32.totalorder %s1666_s25, 4   ;;  %s1852_s30 = smov %s1538_s10 }
 0x37b   : > { %s1853_s10 = smov %s1542_s11  ;;  %s1854_s11 = smov %s1677_s26 }
 0x37c   : > { %s1855_s12 = smov %s1666_s25  ;;  %26 = sbr.rel (!%p24_p0) target bundleno = 12 (0xc), region = 117 }
 0x381   :  { %942 = vsyncpa [#allocation3], 1 }
 0x382   :  { %944 = vsyncpa [#allocation3 + $0x1], 1 }
 0x383   :  { %945 = vsyncpa [#allocation6], 1 }
 0x384   :  { %946 = vsyncpa [#allocation9], 1 }
 0x385   :  { %947 = vsyncpa [#allocation4], 1 }
 0x386   :  { %949 = vsyncpa [#allocation4 + $0x1], 1 }

// kernel: tpu_custom_call.1
= control target key start
LH: loop header
LB: loop body
LE: loop exit
PB: predicated region body
PF: predicated region fallthrough
CT: control target
= control target key end

     0   :  { %s1826_s0 = inlined_call_operand.hbm [shape: f32[16,256], index: 0, kind: input, shape index: {}]   ;;  %s1827_s1 = inlined_call_operand.hbm [shape: bf16[128,128], index: 1, kind: input, shape index: {}]   ;;  %s1828_s2 = inlined_call_operand.vmem [shape: f32[1,128], index: 2, kind: input, shape index: {}]   ;;  %s1829_s3 = inlined_call_operand.hbm [shape: bf16[128,128], index: 3, kind: input, shape index: {}]   ;;  %s1830_s4 = inlined_call_operand.vmem [shape: f32[1,128], index: 4, kind: input, shape index: {}]   ;;  %s1831_s5 = inlined_call_operand.hbm [shape: bf16[128,128], index: 5, kind: input, shape index: {}]   ;;  %s1832_s6 = inlined_call_operand.vmem [shape: f32[1,128], index: 6, kind: input, shape index: {}]   ;;  %s1833_s7 = inlined_call_operand.hbm [shape: bf16[128,128], index: 7, kind: input, shape index: {}]   ;;  %s1834_s8 = inlined_call_operand.vmem [shape: f32[1,128], index: 8, kind: input, shape index: {}]   ;;  %s1835_s9 = inlined_call_operand.hbm [shape: f32[16,256], index: 9, kind: output, shape index: {}]  }
   0x1   :  { %1836 = sst [smem:[#allocation16_spill]] %s1827_s1 }
   0x2   :  { %1837 = sst [smem:[#allocation17_spill]] %s1829_s3 }
   0x3   :  { %1838 = sst [smem:[#allocation18_spill]] %s1831_s5 }
   0x4   :  { %1839 = sst [smem:[#allocation19_spill]] %s1833_s7 }
   0x5   :  { %14 = vsyncpa [#allocation3], 0 }
   0x6   :  { %16 = vsyncpa [#allocation3 + $0x1], 0 }
   0x7   :  { %17 = vsyncpa [#allocation6], 0 }
   0x8   :  { %18 = vsyncpa [#allocation9], 0 }
   0x9   :  { %19 = vsyncpa [#allocation4], 0 }
   0xa   :  { %21 = vsyncpa [#allocation4 + $0x1], 0  ;;  %s1605_s30 = smov 0   ;;  %s1607_s10 = smov 0  }
   0xb   :  { %s1609_s11 = smov 0   ;;  %s1611_s12 = smov 0  }
   0xc LB: > { %s1840_s1 = sld [smem:[#allocation16_spill]]  ;;  %s1629_s16 = sadd.s32 4294967295, %s1546_s12   ;;  %s1546_s12 = sphi %s1611_s12, %s1855_s12   ;;  %s1542_s11 = sphi %s1609_s11, %s1854_s11   ;;  %s1538_s10 = sphi %s1607_s10, %s1853_s10   ;;  %s1534_s30 = sphi %s1605_s30, %s1852_s30  }
   0xd   : > { %p1033_p0 = scmp.ge.s32.totalorder %s1546_s12, 1  ;;  %p48_p1 = scmp.eq.s32.totalorder %s1629_s16, 0 }
   0xe   : > { %p252_p2 = scmp.lt.s32.totalorder %s1546_s12, 3  ;;  %s1548_s18 = smov [#allocation5]  }
   0xf   : > { %s265_s19 = sshll.u32 %s1548_s18, 4  ;;  %s1842_s5 = sld [smem:[#allocation18_spill]]  ;;  %s266_s19 = int_to_ptr.vmem [resolvable:$true] %s265_s19 }
  0x10   : > { %p1634_p3 = pnand %p1033_p0, %p252_p2  ;;  %s1844_s3 = sld [smem:[#allocation17_spill]] }
  0x11   : > { %s1549_s27 = smov [#allocation8]   ;;  %s1550_s29 = smov 64  }
  0x12   : > { %s263_s15 = sshll.u32 %s1840_s1, 4  ;;  %p1236_p4 = pneg %p1634_p3  ;;  %s264_s15 = int_to_ptr.hbm [resolvable:$true] %s263_s15 }
  0x13   : > { %s299_s28 = sshll.u32 %s1549_s27, 4  ;;  %s1551_s13 = smov 4   ;;  %s300_s28 = int_to_ptr.vmem [resolvable:$true] %s299_s28 }
  0x14   : > { %p1646_p6 = pnand %p1236_p4, %p48_p1  ;;  %s1845_s7 = sld [smem:[#allocation19_spill]] }
  0x15   : > { %s297_s22 = sshll.u32 %s1842_s5, 4  ;;  %s1552_s21 = smov [#allocation7]   ;;  %s298_s22 = int_to_ptr.hbm [resolvable:$true] %s297_s22 }
  0x16   : > { %s280_s26 = sshll.u32 %s1844_s3, 4  ;;  %s282_s24 = sshll.u32 %s1552_s21, 4  ;;  %s281_s26 = int_to_ptr.hbm [resolvable:$true] %s280_s26  ;;  %s283_s24 = int_to_ptr.vmem [resolvable:$true] %s282_s24 }
  0x17   : > { %1239 = dma.hbm_to_vmem [thread:$0]  (!%p1646_p6), %s264_s15, 1024, %s266_s19, [#allocation6], %s1550_s29, %s1550_s29, %s1551_s13  }
  0x18   : > { %1245 = dma.hbm_to_vmem [thread:$0]  (!%p1646_p6), %s298_s22, 1024, %s300_s28, [#allocation9], %s1550_s29, %s1550_s29, %s1551_s13  }
  0x19   : > { %1242 = dma.hbm_to_vmem [thread:$0]  (!%p1646_p6), %s281_s26, 1024, %s283_s24, [#allocation6], %s1550_s29, %s1550_s29, %s1551_s13  }
  0x1a   : > { %s314_s20 = sshll.u32 %s1845_s7, 4  ;;  %s1553_s15 = smov [#allocation10]   ;;  %s315_s20 = int_to_ptr.hbm [resolvable:$true] %s314_s20 }
  0x1b   : > { %s316_s19 = sshll.u32 %s1553_s15, 4  ;;  %s1032_s22 = sadd.s32 4294967294, %s1546_s12   ;;  %s317_s19 = int_to_ptr.vmem [resolvable:$true] %s316_s19 }
  0x1c   : > { %1248 = dma.hbm_to_vmem [thread:$0]  (!%p1646_p6), %s315_s20, 1024, %s317_s19, [#allocation9], %s1550_s29, %s1550_s29, %s1551_s13  }
  0x1d   : > { %s1666_s25 = sadd.s32 1, %s1546_s12   ;;  %s34_s28 = sadd.s32 1, %s1542_s11 }
  0x1e   : > { %s31_s27 = ssub.s32 %s1546_s12, %s1666_s25  ;;  %p41_p8 = scmp.ne.s32.totalorder %s1542_s11, %s1538_s10 }
  0x1f   : > { %p32_p7 = scmp.eq.s32.totalorder %s31_s27, 0  ;;  %p42_p9 = scmp.eq.s32.totalorder %s1546_s12, 0 }
  0x20   : > { %p47_p10 = scmp.ne.s32.totalorder %s1538_s10, %s1534_s30  ;;  %p239_p13 = scmp.eq.s32.totalorder %s1629_s16, 1 }
  0x21   : > { %s1677_s26 = scalar_select %p32_p7, %s1542_s11, %s34_s28  }
  0x22   : > { %p1679_p11 = por %p42_p9, %p41_p8  ;;  %p1685_p12 = por %p48_p1, %p47_p10 }
  0x23   : > { %p245_p0 = scmp.eq.s32.totalorder %s1032_s22, 1  ;;  %p1261_p2 = scmp.lt.s32.totalorder %s1546_s12, 2 }
  0x24   : > { %s333_s29 = sand.u32 1, %s1542_s11   ;;  %p1692_p4 = por %p239_p13, %p41_p8 }
  0x25   : > { %p1696_p6 = por %p245_p0, %p47_p10  ;;  %s1039_s20 = sshll.u32 %s333_s29, 4 }
  0x26   : > { %s1182_s21 = sshll.u32 %s1546_s12, 4  ;;  %s337_s27 = scalar_lea.vmem [#allocation2], %s1039_s20 }
  0x27   : > { %s342_s19 = scalar_lea.hbm %s1826_s0, %s1182_s21  ;;  %s346_s28 = sshll.u32 %s337_s27, 4  ;;  %s347_s28 = int_to_ptr.vmem [resolvable:$true] %s346_s28 }
  0x28   : > { %s344_s1 = sshll.u32 %s342_s19, 4  ;;  %p1706_p7 = pnand %p1261_p2, %p1679_p11  ;;  %s345_s1 = int_to_ptr.hbm [resolvable:$true] %s344_s1 }
  0x29   : > { %s334_s3 = scalar_lea.sflag [#allocation3], %s333_s29  ;;  %s1442_s5 = sshra.s32 %s345_s1, 4  ;;  %s1443_s5 = int_to_ptr.hbm [resolvable:$true] %s1442_s5 }
  0x2a   : > { %s1444_s7 = scalar_lea.hbm %s1443_s5, 16  ;;  %p1446_p9 = pneg %p1706_p7 }
  0x2b   : > { %p1445_p8 = scmp.ne.s32.totalorder %s1443_s5, %s1444_s7  ;;  %s1449_s24 = scalar_lea.hbm %s1826_s0, 32 }
  0x2c   : > { %p1450_p11 = scmp.lt.s32.totalorder %s1443_s5, %s1826_s0  ;;  %p1451_p0 = scmp.lt.s32.totalorder %s1449_s24, %s1444_s7 }
  0x2d   : > { %p1447_p10 = pnand %p1446_p9, %p1445_p8 }
  0x2e   : > { %p1452_p2 = por %p1451_p0, %p1450_p11 }
  0x2f   : > { %p1448_p13 = pneg %p1447_p10 }
  0x31   : > { %p1453_p5 = pnand %p1452_p2, %p1448_p13 }
  0x33   : > { %1456 = shalt.err (!%p1453_p5)
}
  0x34   : > { %1252 = dma.hbm_to_vmem [thread:$0]  (!%p1706_p7), %s345_s1, 256, %s347_s28, %s334_s3  }
  0x35   : > { %355 = sbr.rel (%p1634_p3) target bundleno = 883 (0x373), region = 56  ;;  %s1723_s29 = sand.u32 (!%p1634_p3), 1, %s1538_s10  }
  0x36   : > { %s1043_s19 = sshll.u32 (!%p1634_p3), %s1723_s29, 4  ;;  %s358_s27 = scalar_lea.sflag (!%p1634_p3), [#allocation3], %s1723_s29 }
  0x37   : > { %s1729_s5 = scalar_lea.vmem (!%p1634_p3), [#allocation2], %s1043_s19 }
  0x3a   : > { %1517 = dma.done.wait (%p1685_p12), %s358_s27, 256  }
  0x3b   : > { %1519 = vsyncadd (%p1685_p12), %s358_s27, 4294967040 }
  0x3c   : > { %1521 = dma.done.wait (%p48_p1), [#allocation6], 2048  }
  0x3d   : > { %1523 = vsyncadd (%p48_p1), [#allocation6], 4294965248 }
  0x3e   : > { %1525 = dma.done.wait (%p48_p1), [#allocation9], 2048  }
  0x3f   : > { %1527 = vsyncadd (%p48_p1), [#allocation9], 4294965248  ;;  %v1190_v0 = vld [vmem:[#allocation5 + $0x38] sm:$0xff]  ;;  %v1189_v1 = vld [vmem:[#allocation5 + $0x30] sm:$0xff]  ;;  %v1554_v34 = vmov 1065369472  }
  0x40   : > { %488 = vmatpush.bf16.msra.mxu0 %v1190_v0  ;;  %v1188_v2 = vld [vmem:[#allocation5 + $0x28] sm:$0xff]  ;;  %v1187_v3 = vld [vmem:[#allocation5 + $0x20] sm:$0xff]  ;;  %v1186_v4 = vld [vmem:[#allocation5 + $0x18] sm:$0xff]  ;;  %v1757_v35 = vunpack.c.h.bf16 %v1554_v34  ;;  %v1759_v36 = vunpack.c.l.bf16 %v1554_v34  ;;  %s1771_s23 = scalar_lea.vmem [#allocation11], %s1043_s19  ;;  %s1215_s20 = sshll.u32 %s1629_s16, 4 }
  0x41   : > { %v1185_v5 = vld [vmem:[#allocation5 + $0x10] sm:$0xff]  ;;  %v1184_v6 = vld [vmem:[#allocation5 + $0x8] sm:$0xff]  ;;  %v1183_v7 = vld [vmem:[#allocation5] sm:$0xff]  ;;  %s919_s19 = scalar_lea.hbm %s1835_s9, %s1215_s20  ;;  %s921_s27 = sshll.u32 %s1771_s23, 4  ;;  %s922_s27 = int_to_ptr.vmem [resolvable:$true] %s921_s27 }
  0x42   : > { %v1744_v8 = vld [vmem:[%s1729_s5 + $0x8] sm:$0xff]  ;;  %v1306_v10 = vld [vmem:[%s1828_s2] ss:$0 sm:$0xff]  ;;  %v1197_v19 = vld [vmem:[#allocation7 + $0x30] sm:$0xff]  ;;  %s908_s1 = scalar_lea.sflag [#allocation4], %s1723_s29  ;;  %s1492_s28 = scalar_lea.hbm %s1835_s9, 32 }
  0x43   : > { %v419_v9 = vpack.c.bf16 %v1744_v8, %v1744_v8  ;;  %v1198_v16 = vld [vmem:[#allocation7 + $0x38] sm:$0xff]  ;;  %v1196_v22 = vld [vmem:[#allocation7 + $0x28] sm:$0xff]  ;;  %v1195_v25 = vld [vmem:[#allocation7 + $0x20] sm:$0xff] }
  0x44   : > { %489 = vmatpush.bf16.msra.mxu0 %v1189_v1  ;;  %648 = vmatpush.bf16.msra.mxu1 %v1198_v16  ;;  %v1194_v28 = vld [vmem:[#allocation7 + $0x18] sm:$0xff]  ;;  %v1193_v32 = vld [vmem:[#allocation7 + $0x10] sm:$0xff]  ;;  %v1192_v33 = vld [vmem:[#allocation7 + $0x8] sm:$0xff] }
  0x45   : > { %v1191_v38 = vld [vmem:[#allocation7] sm:$0xff] }
  0x48   : > { %490 = vmatpush.bf16.msra.mxu0 %v1188_v2  ;;  %649 = vmatpush.bf16.msra.mxu1 %v1197_v19 }
  0x4c   : > { %491 = vmatpush.bf16.msra.mxu0 %v1187_v3  ;;  %650 = vmatpush.bf16.msra.mxu1 %v1196_v22  ;;  %v1206_v22 = vld [vmem:[#allocation8 + $0x38] sm:$0xff] }
  0x4d   : > { %733 = vmatpush.bf16.msra.mxu2 %v1206_v22 }
  0x50   : > { %492 = vmatpush.bf16.msra.mxu0 %v1186_v4  ;;  %651 = vmatpush.bf16.msra.mxu1 %v1195_v25 }
  0x54   : > { %493 = vmatpush.bf16.msra.mxu0 %v1185_v5  ;;  %652 = vmatpush.bf16.msra.mxu1 %v1194_v28  ;;  %v1204_v28 = vld [vmem:[#allocation8 + $0x28] sm:$0xff] }
  0x58   : > { %494 = vmatpush.bf16.msra.mxu0 %v1184_v6  ;;  %653 = vmatpush.bf16.msra.mxu1 %v1193_v32 }
  0x5c   : > { %495 = vmatpush.bf16.msra.mxu0 %v1183_v7  ;;  %654 = vmatpush.bf16.msra.mxu1 %v1192_v33 }
  0x5f   : > { %496 = vmatmul.bf16.vlgmr.msra.gmra.mxu0 %v419_v9 }
  0x60   : > { %655 = vmatpush.bf16.msra.mxu1 %v1191_v38 }
  0xdc   : > { %v497_v11 = vpop.f32.mrf.mxu0 }
  0xdd   : > { %v498_v12 = vadd.f32 %v1306_v10, %v497_v11 }
  0xdf   : > { %v501_v13 = vpack.c.bf16 %v498_v12, %v498_v12 }
  0xe1   : > { %v1751_v14 = vunpack.c.l.bf16 %v501_v13 }
  0xe3   : > { %v503_v15 = vmul.f32 0.70703125, %v1751_v14 }
  0xe4   : > { %v499_v17 = vpop.f32.mrf.mxu0 }
  0xe5   : > { %v1754_v18 = vpack.c.bf16 %v503_v15, %v503_v15 }
  0xe7   : > { %v505_v20 = vand.u32 2147450879, %v1754_v18 }
  0xe9   : > { %v506_v21 = vunpack.c.l.bf16 %v505_v20 }
  0xeb   : > { %v507_v23 = vmul.f32 0.328125, %v506_v21  ;;  %v548_v50 = vmul.f32 %v506_v21, %v506_v21 }
  0xed   : > { %v508_v24 = vpack.c.bf16 %v507_v23, %v507_v23  ;;  %v549_v53 = vpack.c.bf16 %v548_v50, %v548_v50  ;;  %v661_v50 = vld [vmem:[%s1729_s5] sm:$0xff]  ;;  %s923_s5 = sshll.u32 %s919_s19, 4  ;;  %s924_s5 = int_to_ptr.hbm [resolvable:$true] %s923_s5 }
  0xee   : > { %s1486_s16 = sshra.s32 %s924_s5, 4  ;;  %s1487_s16 = int_to_ptr.hbm [resolvable:$true] %s1486_s16 }
  0xef   : > { %v509_v26 = vunpack.c.l.bf16 %v508_v24  ;;  %v550_v56 = vunpack.c.l.bf16 %v549_v53  ;;  %v1205_v24 = vld [vmem:[#allocation8 + $0x30] sm:$0xff]  ;;  %s1488_s3 = scalar_lea.hbm %s1487_s16, 16  ;;  %p1493_p12 = scmp.lt.s32.totalorder %s1487_s16, %s1835_s9 }
  0xf0   : > { %734 = vmatpush.bf16.msra.mxu2 %v1205_v24  ;;  %p1489_p1 = scmp.ne.s32.totalorder %s1487_s16, %s1488_s3  ;;  %p1494_p7 = scmp.lt.s32.totalorder %s1492_s28, %s1488_s3 }
  0xf1   : > { %v510_v27 = vadd.f32 1.0, %v509_v26  ;;  %v551_v59 = vsub.f32 0.0, %v550_v56  ;;  %v564_v26 = vunpack.c.l.bf16 %v1754_v18 }
  0xf2   : > { %p1490_p3 = pnand %p1489_p1, %p1692_p4  ;;  %p1495_p8 = por %p1494_p7, %p1493_p12 }
  0xf3   : > { %v511_v29 = vpack.c.bf16 %v510_v27, %v510_v27  ;;  %v552_v62 = vpack.c.bf16 %v551_v59, %v551_v59  ;;  %vm565_vm0 = vcmp.ge.f32.partialorder %v564_v26, 0.0 }
  0xf4   : > { %735 = vmatpush.bf16.msra.mxu2 %v1204_v28  ;;  %vm569_vm1 = vmpackc.low %vm565_vm0, %vm565_vm0  ;;  %p1491_p5 = pneg %p1490_p3 }
  0xf5   : > { %v514_v30 = vunpack.c.h.bf16 %v511_v29  ;;  %v515_v31 = vunpack.c.l.bf16 %v511_v29  ;;  %v553_v1 = vunpack.c.l.bf16 %v552_v62 }
  0xf6   : > { %p1496_p9 = pnand %p1495_p8, %p1491_p5 }
  0xf7   : > { %1310 = vrcp.f32 %v514_v30  ;;  %v554_v4 = vmul.f32 1.442695, %v553_v1 }
  0xf8   : > { %1312 = vrcp.f32 %v515_v31  ;;  %v1203_v31 = vld [vmem:[#allocation8 + $0x20] sm:$0xff] }
  0xf9   : > { %1314 = vpow2.f32 %v554_v4  ;;  %736 = vmatpush.bf16.msra.mxu2 %v1203_v31 }
  0xfd   : > { %v1311_v37 = vpop.eup %1310 }
  0xfe   : > { %v1313_v39 = vpop.eup %1312  ;;  %v517_v40 = vmul.f32 %v1311_v37, %v1757_v35  ;;  %v1202_v37 = vld [vmem:[#allocation8 + $0x18] sm:$0xff] }
  0xff   : > { %v519_v41 = vmul.f32 %v1313_v39, %v1759_v36  ;;  %v1315_v11 = vpop.eup %1314  ;;  %737 = vmatpush.bf16.msra.mxu2 %v1202_v37 }
 0x100   : > { %v556_v13 = vpack.c.bf16 %v1315_v11, %v1315_v11 }
 0x101   : > { %v520_v42 = vpack.c.bf16 %v517_v40, %v519_v41  ;;  %v1201_v40 = vld [vmem:[#allocation8 + $0x10] sm:$0xff] }
 0x102   : > { %v558_v17 = vunpack.c.l.bf16 %v556_v13  ;;  %v1209_v13 = vld [vmem:[#allocation10 + $0x10] sm:$0xff] }
 0x103   : > { %v521_v43 = vunpack.c.l.bf16 %v520_v42  ;;  %738 = vmatpush.bf16.msra.mxu2 %v1201_v40 }
 0x105   : > { %v522_v44 = vmul.f32 1.0625, %v521_v43 }
 0x107   : > { %v523_v45 = vpack.c.bf16 %v522_v44, %v522_v44 }
 0x109   : > { %v524_v46 = vunpack.c.l.bf16 %v523_v45 }
 0x10b   : > { %v525_v47 = vadd.f32 -1.453125, %v524_v46  ;;  %v1200_v46 = vld [vmem:[#allocation8 + $0x8] sm:$0xff] }
 0x10c   : > { %739 = vmatpush.bf16.msra.mxu2 %v1200_v46 }
 0x10d   : > { %v526_v48 = vpack.c.bf16 %v525_v47, %v525_v47  ;;  %v1199_v47 = vld [vmem:[#allocation8] sm:$0xff] }
 0x10f   : > { %v527_v49 = vunpack.c.l.bf16 %v526_v48  ;;  %v1307_v48 = vld [vmem:[%s1830_s4] ss:$0 sm:$0xff] }
 0x110   : > { %740 = vmatpush.bf16.msra.mxu2 %v1199_v47 }
 0x111   : > { %v528_v51 = vmul.f32 %v527_v49, %v521_v43 }
 0x113   : > { %v529_v52 = vpack.c.bf16 %v528_v51, %v528_v51 }
 0x115   : > { %v530_v54 = vunpack.c.l.bf16 %v529_v52 }
 0x117   : > { %v531_v55 = vadd.f32 1.421875, %v530_v54  ;;  %v1308_v54 = vld [vmem:[%s1832_s6] ss:$0 sm:$0xff] }
 0x119   : > { %v532_v57 = vpack.c.bf16 %v531_v55, %v531_v55 }
 0x11b   : > { %v533_v58 = vunpack.c.l.bf16 %v532_v57 }
 0x11d   : > { %v534_v60 = vmul.f32 %v533_v58, %v521_v43 }
 0x11f   : > { %v535_v61 = vpack.c.bf16 %v534_v60, %v534_v60  ;;  %v1214_v60 = vld [vmem:[#allocation10 + $0x38] sm:$0xff] }
 0x120   : > { %891 = vmatpush.bf16.msra.mxu3 %v1214_v60 }
 0x121   : > { %v536_v63 = vunpack.c.l.bf16 %v535_v61 }
 0x123   : > { %v537_v0 = vadd.f32 -0.28515625, %v536_v63  ;;  %v1213_v63 = vld [vmem:[#allocation10 + $0x30] sm:$0xff] }
 0x124   : > { %892 = vmatpush.bf16.msra.mxu3 %v1213_v63 }
 0x125   : > { %v538_v2 = vpack.c.bf16 %v537_v0, %v537_v0 }
 0x127   : > { %v539_v3 = vunpack.c.l.bf16 %v538_v2  ;;  %v1212_v2 = vld [vmem:[#allocation10 + $0x28] sm:$0xff] }
 0x128   : > { %893 = vmatpush.bf16.msra.mxu3 %v1212_v2 }
 0x129   : > { %v540_v5 = vmul.f32 %v539_v3, %v521_v43 }
 0x12b   : > { %v541_v6 = vpack.c.bf16 %v540_v5, %v540_v5  ;;  %v1211_v5 = vld [vmem:[#allocation10 + $0x20] sm:$0xff] }
 0x12c   : > { %894 = vmatpush.bf16.msra.mxu3 %v1211_v5 }
 0x12d   : > { %v542_v7 = vunpack.c.l.bf16 %v541_v6 }
 0x12f   : > { %v543_v9 = vadd.f32 0.25390625, %v542_v7 }
 0x131   : > { %v544_v10 = vpack.c.bf16 %v543_v9, %v543_v9  ;;  %v1210_v9 = vld [vmem:[#allocation10 + $0x18] sm:$0xff] }
 0x132   : > { %895 = vmatpush.bf16.msra.mxu3 %v1210_v9 }
 0x133   : > { %v545_v12 = vunpack.c.l.bf16 %v544_v10 }
 0x135   : > { %v546_v15 = vmul.f32 %v545_v12, %v521_v43 }
 0x136   : > { %896 = vmatpush.bf16.msra.mxu3 %v1209_v13 }
 0x137   : > { %v547_v16 = vpack.c.bf16 %v546_v15, %v546_v15  ;;  %v1208_v15 = vld [vmem:[#allocation10 + $0x8] sm:$0xff] }
 0x139   : > { %v557_v19 = vunpack.c.l.bf16 %v547_v16 }
 0x13a   : > { %897 = vmatpush.bf16.msra.mxu3 %v1208_v15 }
 0x13b   : > { %v559_v20 = vmul.f32 %v558_v17, %v557_v19  ;;  %v1207_v17 = vld [vmem:[#allocation10] sm:$0xff] }
 0x13d   : > { %v560_v21 = vpack.c.bf16 %v559_v20, %v559_v20 }
 0x13e   : > { %898 = vmatpush.bf16.msra.mxu3 %v1207_v17  ;;  %v1309_v17 = vld [vmem:[%s1834_s8] ss:$0 sm:$0xff] }
 0x13f   : > { %v561_v23 = vunpack.c.l.bf16 %v560_v21 }
 0x141   : > { %v562_v25 = vsub.f32 1.0, %v561_v23 }
 0x143   : > { %v563_v27 = vpack.c.bf16 %v562_v25, %v562_v25 }
 0x145   : > { %v566_v29 = vunpack.c.l.bf16 %v563_v27 }
 0x147   : > { %v567_v30 = vsub.f32 0.0, %v566_v29 }
 0x149   : > { %v568_v32 = vpack.c.bf16 %v567_v30, %v567_v30 }
 0x14b   : > { %v570_v33 = vsel %vm569_vm1, %v563_v27, %v568_v32 }
 0x14c   : > { %v571_v34 = vunpack.c.l.bf16 %v570_v33 }
 0x14e   : > { %v572_v38 = vadd.f32 1.0, %v571_v34 }
 0x150   : > { %v573_v39 = vpack.c.bf16 %v572_v38, %v572_v38 }
 0x152   : > { %v574_v18 = vunpack.c.l.bf16 %v573_v39 }
 0x154   : > { %v575_v41 = vmul.f32 0.5, %v574_v18 }
 0x156   : > { %v576_v42 = vpack.c.bf16 %v575_v41, %v575_v41 }
 0x158   : > { %v577_v43 = vunpack.c.l.bf16 %v576_v42 }
 0x15a   : > { %v578_v44 = vmul.f32 %v577_v43, %v1751_v14 }
 0x15c   : > { %v579_v45 = vpack.c.bf16 %v578_v44, %v578_v44 }
 0x15e   : > { %656 = vmatmul.bf16.vlgmr.msra.gmra.mxu1 %v579_v45 }
 0x1db   : > { %v657_v49 = vpop.f32.mrf.mxu1 }
 0x1dc   : > { %v658_v51 = vadd.f32 %v1307_v48, %v657_v49 }
 0x1de   : > { %v662_v52 = vadd.f32 %v661_v50, %v658_v51 }
 0x1e0   : > { %663 = vst [vmem:[%s1771_s23] sm:$0xff] %v662_v52  ;;  %v664_v14 = vpack.c.bf16 %v662_v52, %v662_v52 }
 0x1e2   : > { %741 = vmatmul.bf16.vlgmr.msra.gmra.mxu2 %v664_v14 }
 0x1e3   : > { %v659_v53 = vpop.f32.mrf.mxu1 }
 0x265   : > { %v742_v55 = vpop.f32.mrf.mxu2 }
 0x266   : > { %v743_v56 = vadd.f32 %v1308_v54, %v742_v55 }
 0x268   : > { %v746_v57 = vpack.c.bf16 %v743_v56, %v743_v56 }
 0x26a   : > { %v1777_v58 = vunpack.c.l.bf16 %v746_v57 }
 0x26c   : > { %v748_v59 = vmul.f32 0.70703125, %v1777_v58 }
 0x26d   : > { %v744_v61 = vpop.f32.mrf.mxu2 }
 0x26e   : > { %v1780_v62 = vpack.c.bf16 %v748_v59, %v748_v59 }
 0x270   : > { %v750_v0 = vand.u32 2147450879, %v1780_v62 }
 0x272   : > { %v751_v1 = vunpack.c.l.bf16 %v750_v0 }
 0x274   : > { %v752_v3 = vmul.f32 0.328125, %v751_v1  ;;  %v791_v30 = vmul.f32 %v751_v1, %v751_v1  ;;  %v807_v1 = vunpack.c.l.bf16 %v1780_v62 }
 0x276   : > { %v753_v4 = vpack.c.bf16 %v752_v3, %v752_v3  ;;  %v792_v33 = vpack.c.bf16 %v791_v30, %v791_v30  ;;  %vm808_vm2 = vcmp.ge.f32.partialorder %v807_v1, 0.0 }
 0x277   : > { %vm812_vm3 = vmpackc.low %vm808_vm2, %vm808_vm2 }
 0x278   : > { %v754_v6 = vunpack.c.l.bf16 %v753_v4  ;;  %v793_v38 = vunpack.c.l.bf16 %v792_v33 }
 0x27a   : > { %v755_v7 = vadd.f32 1.0, %v754_v6  ;;  %v794_v40 = vsub.f32 0.0, %v793_v38 }
 0x27c   : > { %v756_v10 = vpack.c.bf16 %v755_v7, %v755_v7  ;;  %v795_v41 = vpack.c.bf16 %v794_v40, %v794_v40 }
 0x27e   : > { %v757_v11 = vunpack.c.h.bf16 %v756_v10  ;;  %v758_v12 = vunpack.c.l.bf16 %v756_v10  ;;  %v796_v44 = vunpack.c.l.bf16 %v795_v41 }
 0x280   : > { %1316 = vrcp.f32 %v757_v11  ;;  %v797_v47 = vmul.f32 1.442695, %v796_v44 }
 0x281   : > { %1318 = vrcp.f32 %v758_v12 }
 0x282   : > { %1320 = vpow2.f32 %v797_v47 }
 0x286   : > { %v1317_v16 = vpop.eup %1316 }
 0x287   : > { %v1319_v19 = vpop.eup %1318  ;;  %v760_v20 = vmul.f32 %v1317_v16, %v1757_v35 }
 0x288   : > { %v762_v21 = vmul.f32 %v1319_v19, %v1759_v36  ;;  %v1321_v14 = vpop.eup %1320 }
 0x289   : > { %v799_v54 = vpack.c.bf16 %v1321_v14, %v1321_v14 }
 0x28a   : > { %v763_v22 = vpack.c.bf16 %v760_v20, %v762_v21 }
 0x28b   : > { %v801_v57 = vunpack.c.l.bf16 %v799_v54 }
 0x28c   : > { %v764_v23 = vunpack.c.l.bf16 %v763_v22 }
 0x28e   : > { %v765_v24 = vmul.f32 1.0625, %v764_v23 }
 0x290   : > { %v766_v25 = vpack.c.bf16 %v765_v24, %v765_v24 }
 0x292   : > { %v767_v26 = vunpack.c.l.bf16 %v766_v25 }
 0x294   : > { %v768_v27 = vadd.f32 -1.453125, %v767_v26 }
 0x296   : > { %v769_v28 = vpack.c.bf16 %v768_v27, %v768_v27 }
 0x298   : > { %v770_v29 = vunpack.c.l.bf16 %v769_v28 }
 0x29a   : > { %v771_v31 = vmul.f32 %v770_v29, %v764_v23 }
 0x29c   : > { %v772_v32 = vpack.c.bf16 %v771_v31, %v771_v31 }
 0x29e   : > { %v773_v34 = vunpack.c.l.bf16 %v772_v32 }
 0x2a0   : > { %v774_v37 = vadd.f32 1.421875, %v773_v34 }
 0x2a2   : > { %v775_v39 = vpack.c.bf16 %v774_v37, %v774_v37 }
 0x2a4   : > { %v776_v35 = vunpack.c.l.bf16 %v775_v39 }
 0x2a6   : > { %v777_v36 = vmul.f32 %v776_v35, %v764_v23 }
 0x2a8   : > { %v778_v18 = vpack.c.bf16 %v777_v36, %v777_v36 }
 0x2aa   : > { %v779_v42 = vunpack.c.l.bf16 %v778_v18 }
 0x2ac   : > { %v780_v43 = vadd.f32 -0.28515625, %v779_v42 }
 0x2ae   : > { %v781_v45 = vpack.c.bf16 %v780_v43, %v780_v43 }
 0x2b0   : > { %v782_v46 = vunpack.c.l.bf16 %v781_v45 }
 0x2b2   : > { %v783_v48 = vmul.f32 %v782_v46, %v764_v23 }
 0x2b4   : > { %v784_v49 = vpack.c.bf16 %v783_v48, %v783_v48 }
 0x2b6   : > { %v785_v50 = vunpack.c.l.bf16 %v784_v49 }
 0x2b8   : > { %v786_v51 = vadd.f32 0.25390625, %v785_v50 }
 0x2ba   : > { %v787_v52 = vpack.c.bf16 %v786_v51, %v786_v51 }
 0x2bc   : > { %v788_v53 = vunpack.c.l.bf16 %v787_v52 }
 0x2be   : > { %v789_v55 = vmul.f32 %v788_v53, %v764_v23 }
 0x2c0   : > { %v790_v56 = vpack.c.bf16 %v789_v55, %v789_v55 }
 0x2c2   : > { %v800_v59 = vunpack.c.l.bf16 %v790_v56 }
 0x2c4   : > { %v802_v60 = vmul.f32 %v801_v57, %v800_v59 }
 0x2c6   : > { %v803_v61 = vpack.c.bf16 %v802_v60, %v802_v60 }
 0x2c8   : > { %v804_v63 = vunpack.c.l.bf16 %v803_v61 }
 0x2ca   : > { %v805_v0 = vsub.f32 1.0, %v804_v63 }
 0x2cc   : > { %v806_v2 = vpack.c.bf16 %v805_v0, %v805_v0 }
 0x2ce   : > { %v809_v3 = vunpack.c.l.bf16 %v806_v2 }
 0x2d0   : > { %v810_v4 = vsub.f32 0.0, %v809_v3 }
 0x2d2   : > { %v811_v5 = vpack.c.bf16 %v810_v4, %v810_v4 }
 0x2d4   : > { %v813_v6 = vsel %vm812_vm3, %v806_v2, %v811_v5 }
 0x2d5   : > { %v814_v7 = vunpack.c.l.bf16 %v813_v6 }
 0x2d7   : > { %v815_v9 = vadd.f32 1.0, %v814_v7 }
 0x2d9   : > { %v816_v10 = vpack.c.bf16 %v815_v9, %v815_v9 }
 0x2db   : > { %v817_v11 = vunpack.c.l.bf16 %v816_v10 }
 0x2dd   : > { %v818_v12 = vmul.f32 0.5, %v817_v11 }
 0x2df   : > { %v819_v13 = vpack.c.bf16 %v818_v12, %v818_v12 }
 0x2e1   : > { %v820_v15 = vunpack.c.l.bf16 %v819_v13 }
 0x2e3   : > { %v821_v62 = vmul.f32 %v820_v15, %v1777_v58 }
 0x2e5   : > { %v822_v16 = vpack.c.bf16 %v821_v62, %v821_v62 }
 0x2e7   : > { %899 = vmatmul.bf16.vlgmr.msra.gmra.mxu3 %v822_v16 }
 0x36a   : > { %v900_v19 = vpop.f32.mrf.mxu3 }
 0x36b   : > { %v901_v20 = vadd.f32 %v1309_v17, %v900_v19 }
 0x36d   : > { %v905_v21 = vadd.f32 %v901_v20, %v1744_v8 }
 0x36f   : > { %906 = vst [vmem:[%s1771_s23 + $0x8] sm:$0xff] %v905_v21 }
 0x370   : > { %1499 = shalt.err (!%p1496_p9)
}
 0x371   : > { %1234 = dma.vmem_to_hbm [thread:$0]  (%p1692_p4), %s922_s27, 256, %s924_s5, %s908_s1  }
 0x372   : > { %v902_v8 = vpop.f32.mrf.mxu3 }
 0x373 PF: > { %s935_s29 = sand.u32 1, %s1534_s30   ;;  %p1851_p10 = scmp.ge.s32.totalorder %s1546_s12, 2 }
 0x374   : > { %s936_s23 = scalar_lea.sflag [#allocation4], %s935_s29 }
 0x375   : > { %p1254_p13 = pnand %p1851_p10, %p1696_p6 }
 0x377   : > { %p1255_p11 = pneg %p1254_p13 }
 0x379   : > { %1529 = dma.done.wait (%p1255_p11), %s936_s23, 256  }
 0x37a   : > { %1531 = vsyncadd (%p1255_p11), %s936_s23, 4294967040  ;;  %p24_p0 = scmp.ge.s32.totalorder %s1666_s25, 4   ;;  %s1852_s30 = smov %s1538_s10 }
 0x37b   : > { %s1853_s10 = smov %s1542_s11  ;;  %s1854_s11 = smov %s1677_s26 }
 0x37c   : > { %s1855_s12 = smov %s1666_s25  ;;  %26 = sbr.rel (!%p24_p0) target bundleno = 12 (0xc), region = 117 }
 0x381   :  { %942 = vsyncpa [#allocation3], 1 }
 0x382   :  { %944 = vsyncpa [#allocation3 + $0x1], 1 }
 0x383   :  { %945 = vsyncpa [#allocation6], 1 }
 0x384   :  { %946 = vsyncpa [#allocation9], 1 }
 0x385   :  { %947 = vsyncpa [#allocation4], 1 }
 0x386   :  { %949 = vsyncpa [#allocation4 + $0x1], 1 }

</bundles_post_ra>
